<compile_context>
chip_gen: v7x
topology: tpu7x:2x2x1
jax: 0.10.0
libtpu: 0.0.40
codegen_flags: <defaults>
</compile_context>

<pallas_src>
import math
from functools import partial

import jax
import jax.numpy as jnp
from jax.experimental import pallas as pl
from jax.experimental.pallas import tpu as pltpu


# --------------------------------------------------------------------------- kernel
def mha_kernel(q_ref, v_ref, mask_ref,
               wq_ref, bq_ref, wv_ref, bv_ref, wo_ref, bo_ref,
               o_ref,
               k_scr, v_scr, m_scr, l_scr, acc_scr,
               *, h: int, d_k: int, tq: int, tk: int, s: int):
    t = pl.program_id(1)           # query-tile index
    kt = pl.program_id(2)          # key-tile index (reduction axis, innermost)
    n_kt = pl.num_programs(2)

    # ---- Stage projected K (== projected Q, module bug) and V once per batch.
    #      Full-width (N = d_model) matmuls; head split via lane slices (free when
    #      d_k % 128 == 0, one cheap once-per-batch relayout otherwise).
    #      d_k**-0.25 is pre-folded into w_q / b_q; it hits both Q and K (same
    #      staged tensor), yielding exactly the 1/sqrt(d_k) score scale.
    @pl.when(jnp.logical_and(t == 0, kt == 0))
    def _stage():
        kproj = (jnp.dot(q_ref[0], wq_ref[...],
                         preferred_element_type=jnp.float32)
                 + bq_ref[...]).astype(k_scr.dtype)           # (S, D) bf16
        for head in range(h):
            k_scr[head] = kproj[:, head * d_k:(head + 1) * d_k]
        vproj = (jnp.dot(v_ref[0], wv_ref[...],
                         preferred_element_type=jnp.float32)
                 + bv_ref[...]).astype(v_scr.dtype)           # (S, D) bf16
        for head in range(h):
            v_scr[head] = vproj[:, head * d_k:(head + 1) * d_k]

    # ---- Reset online-softmax state at the start of every query tile.
    @pl.when(kt == 0)
    def _init():
        m_scr[...] = jnp.full(m_scr.shape, -jnp.inf, jnp.float32)
        l_scr[...] = jnp.zeros(l_scr.shape, jnp.float32)
        acc_scr[...] = jnp.zeros(acc_scr.shape, jnp.float32)

    # ---- Current query / key / value tiles (reads of resident VMEM scratch).
    if tq == s:
        q_heads = k_scr[...]                                   # (h, TQ, d_k)
    else:
        q0 = pl.multiple_of(t * tq, tq)
        q_heads = k_scr[:, pl.ds(q0, tq), :]
    if tk == s:
        k_tile = k_scr[...]                                    # (h, TK, d_k)
        v_tile = v_scr[...]
    else:
        k0 = pl.multiple_of(kt * tk, tk)
        k_tile = k_scr[:, pl.ds(k0, tk), :]
        v_tile = v_scr[:, pl.ds(k0, tk), :]

    # ---- Head-batched scores for this (query tile, key tile) only: (h, TQ, TK) f32.
    scores = jnp.einsum('hqd,hkd->hqk', q_heads, k_tile,
                        preferred_element_type=jnp.float32)
    # Additive mask bias (0 keep / -1e9 drop); int8 mask, no full-tensor select.
    keep = mask_ref[0, 0].astype(jnp.float32)                  # (TQ, TK)
    scores = scores + ((keep - 1.0) * 1e9)[None, :, :]

    # ---- Online softmax update (flash pattern), f32 state, exp on the EUP.
    m_prev = m_scr[...]
    m_new = jnp.maximum(m_prev, jnp.max(scores, axis=-1, keepdims=True))
    alpha = jnp.exp(m_prev - m_new)
    p = jnp.exp(scores - m_new)
    l_scr[...] = alpha * l_scr[...] + jnp.sum(p, axis=-1, keepdims=True)
    acc_scr[...] = alpha * acc_scr[...] + jnp.einsum(
        'hqk,hkd->hqd', p.astype(v_tile.dtype), v_tile,
        preferred_element_type=jnp.float32)
    m_scr[...] = m_new
    # TODO(synk): dropout on the attention probabilities (training mode) omitted.

    # ---- Last key tile: normalize, project heads back to d_model, store the tile.
    @pl.when(kt == n_kt - 1)
    def _finalize():
        inv_l = pl.reciprocal(l_scr[...], approx=True)         # (h, TQ, 1), EUP
        ctx = (acc_scr[...] * inv_l).astype(wo_ref.dtype)      # (h, TQ, d_k) bf16
        # Per-head accumulate straight into one (TQ, D) f32 accumulator:
        # no (h, TQ, D) intermediate, no extra reduction pass.
        y = jnp.dot(ctx[0], wo_ref[0], preferred_element_type=jnp.float32)
        for head in range(1, h):
            y = y + jnp.dot(ctx[head], wo_ref[head],
                            preferred_element_type=jnp.float32)
        o_ref[0] = (y + bo_ref[...]).astype(o_ref.dtype)


# ------------------------------------------------------------------ tiling / budget
def _round_up(x: int, m: int) -> int:
    return ((x + m - 1) // m) * m


def _vmem_bytes(S, D, h, d_k, tq, tk):
    """Peak-VMEM estimate: double-buffered pipeline blocks, persistent scratch
    (incl. lane padding when d_k < 128) and the larger of the two transient live
    sets (staging pass vs. softmax/projection pass)."""
    bf, f32 = 2, 4
    Sp, Dp = _round_up(S, 8), _round_up(D, 128)
    dkp = _round_up(d_k, 128)                        # lane padding of the head dim
    tqp, tkp = _round_up(tq, 8), _round_up(tk, 128)
    blocks = 2 * (2 * Sp * Dp * bf                   # q, v input blocks
                  + tqp * tkp                        # int8 mask block
                  + tqp * Dp * f32                   # f32 output block
                  + 2 * Dp * Dp * bf                 # w_q, w_v (full width)
                  + h * _round_up(d_k, 8) * Dp * bf  # w_o (head-split)
                  + 3 * 8 * Dp * f32)                # biases
    scratch = (2 * h * Sp * dkp * bf                 # staged K(==Q) / V
               + 2 * h * tqp * 128 * f32             # m, l running stats
               + h * tqp * dkp * f32)                # unnormalized accumulator
    staging_live = Sp * Dp * (f32 + bf)              # projection temp + bf16 copy
    softmax_live = (3 * h * tqp * tkp * f32          # scores / exp / p temporaries
                    + h * tqp * dkp * f32            # p @ V partial
                    + tqp * Dp * f32)                # out-proj accumulator
    return blocks + scratch + max(staging_live, softmax_live)


def _vmem_budget():
    """(physical VMEM, usable budget): ~48 MiB on v7x (64 MiB per-TC VMEM),
    ~100 MiB on v5e / v6e (128 MiB)."""
    cap = 64 * 2**20                                  # conservative default
    try:
        info = pltpu.get_tpu_info()
        cap = int(getattr(info, "vmem_capacity_bytes", cap) or cap)
    except Exception:
        pass
    budget = min(cap - 16 * 2**20, 100 * 2**20)
    budget = max(budget, cap // 2)
    return cap, budget


def _pick_tiles(S, D, h, d_k, budget):
    """Largest (query, key) tile pair whose peak-VMEM estimate fits the budget."""
    cands = [S] + [c for c in (1024, 512, 256, 128) if c < S and S % c == 0]
    best = None
    for tq in cands:
        for tk in cands:
            if _vmem_bytes(S, D, h, d_k, tq, tk) <= budget:
                score = (tq * tk, min(tq, tk))        # fewest grid steps, balanced
                if best is None or score > best[0]:
                    best = (score, tq, tk)
    if best is None:                                   # nothing fits: smallest tiles
        return cands[-1], cands[-1]
    return best[1], best[2]


# --------------------------------------------------------------------------- wrapper
def multi_head_attention(q, k, v, mask, params, h, *, q_tile=None, k_tile=None):
    """q,k,v: (B,S,D) f32; mask: (B or 1, 1, S, S) nonzero=keep; params = nn.Linear tensors."""
    B, S, D = q.shape
    assert D % h == 0, "d_model is not divisible by h"
    d_k = D // h
    wq, bq, wk, bk, wv, bv, wo, bo = params     # nn.Linear layout: W (out,in), b (out,)
    # Dead K path (module overwrites key with query): never touches the output.
    del k, wk, bk

    cdt = jnp.bfloat16
    cap, budget = _vmem_budget()
    if q_tile is None or k_tile is None:
        TQ, TK = _pick_tiles(S, D, h, d_k, budget)
    else:
        TQ, TK = q_tile, k_tile
    assert S % TQ == 0 and S % TK == 0, "tiles must divide the sequence length"

    est = _vmem_bytes(S, D, h, d_k, TQ, TK)
    vmem_limit = int(min(cap - 8 * 2**20, max(budget, int(est * 1.1))))

    # Fold the 1/sqrt(d_k) score scale into the Q projection (applied twice through
    # Q and K == same staged tensor -> exactly d_k**-0.5).  Done once, outside.
    scale_q = float(d_k) ** -0.25
    wq_t = (wq.T * scale_q).astype(cdt)                    # (D, D): x @ wq_t
    bq_s = (bq * scale_q).reshape(1, D).astype(jnp.float32)
    wv_t = wv.T.astype(cdt)                                # (D, D)
    bv_s = bv.reshape(1, D).astype(jnp.float32)
    wo_h = wo.T.reshape(h, d_k, D).astype(cdt)             # head-split output proj
    bo_s = bo.reshape(1, D).astype(jnp.float32)

    q_bf = q.astype(cdt)
    v_bf = v.astype(cdt)

    assert mask.shape[1] == 1 and mask.shape[-2:] == (S, S), \
        "mask must broadcast over heads: (B or 1, 1, S, S)"
    mask_i8 = (mask != 0).astype(jnp.int8)
    if mask_i8.shape[0] == 1:
        mask_idx = lambda b, t, kt: (0, 0, t, kt)
    else:
        mask_idx = lambda b, t, kt: (b, 0, t, kt)

    c2 = lambda b, t, kt: (0, 0)
    c3 = lambda b, t, kt: (0, 0, 0)

    in_specs = [
        pl.BlockSpec((1, S, D), lambda b, t, kt: (b, 0, 0)),   # q (bf16, per batch)
        pl.BlockSpec((1, S, D), lambda b, t, kt: (b, 0, 0)),   # v (bf16, per batch)
        pl.BlockSpec((1, 1, TQ, TK), mask_idx),                # mask (int8 tile)
        pl.BlockSpec((D, D), c2),                              # w_q (scaled, T)
        pl.BlockSpec((1, D), c2),                              # b_q (scaled)
        pl.BlockSpec((D, D), c2),                              # w_v (T)
        pl.BlockSpec((1, D), c2),                              # b_v
        pl.BlockSpec((h, d_k, D), c3),                         # w_o head-split
        pl.BlockSpec((1, D), c2),                              # b_o
    ]
    out_spec = pl.BlockSpec((1, TQ, D), lambda b, t, kt: (b, t, 0))

    grid = (B, S // TQ, S // TK)

    return pl.pallas_call(
        partial(mha_kernel, h=h, d_k=d_k, tq=TQ, tk=TK, s=S),
        out_shape=jax.ShapeDtypeStruct((B, S, D), jnp.float32),
        grid_spec=pltpu.PrefetchScalarGridSpec(
            num_scalar_prefetch=0,
            grid=grid,
            in_specs=in_specs,
            out_specs=out_spec,
            scratch_shapes=[
                pltpu.VMEM((h, S, d_k), cdt),          # staged K (== projected Q)
                pltpu.VMEM((h, S, d_k), cdt),          # staged V
                pltpu.VMEM((h, TQ, 1), jnp.float32),   # running max m
                pltpu.VMEM((h, TQ, 1), jnp.float32),   # running sum l
                pltpu.VMEM((h, TQ, d_k), jnp.float32), # unnormalized accumulator
            ],
        ),
        compiler_params=pltpu.CompilerParams(
            dimension_semantics=("parallel", "arbitrary", "arbitrary"),
            vmem_limit_bytes=vmem_limit,
        ),
    )(q_bf, v_bf, mask_i8, wq_t, bq_s, wv_t, bv_s, wo_h, bo_s)


# ------------------------------------------------------------------------- reference
def reference(q, k, v, mask, params, h):
    """Plain-JAX f32 reference with the same (buggy) semantics as the PyTorch module."""
    B, S, D = q.shape
    d_k = D // h
    wq, bq, wk, bk, wv, bv, wo, bo = params
    Q = q @ wq.T + bq
    _K = k @ wk.T + bk                       # computed, then overwritten (module bug)
    V = v @ wv.T + bv
    Qh = Q.reshape(B, S, h, d_k).transpose(0, 2, 1, 3)
    Kh = Q.reshape(B, S, h, d_k).transpose(0, 2, 1, 3)   # key == query
    Vh = V.reshape(B, S, h, d_k).transpose(0, 2, 1, 3)
    scores = (Qh @ jnp.swapaxes(Kh, -1, -2)) / math.sqrt(d_k)
    scores = jnp.where(mask == 0, -1000000000.0, scores)
    p = jax.nn.softmax(scores, axis=-1)
    x = (p @ Vh).transpose(0, 2, 1, 3).reshape(B, S, D)
    return x @ wo.T + bo


# ------------------------------------------------------------------------------ main
if __name__ == "__main__":
    key = jax.random.PRNGKey(0)

    def linear_params(wkey, bkey, d):
        w = 0.05 * jax.random.normal(wkey, (d, d), dtype=jnp.float32)   # (out, in)
        b = 0.05 * jax.random.normal(bkey, (d,), dtype=jnp.float32)
        return w, b

    def make_params(pkey, d):
        ks = jax.random.split(pkey, 8)
        wq, bq = linear_params(ks[0], ks[1], d)
        wk, bk = linear_params(ks[2], ks[3], d)
        wv, bv = linear_params(ks[4], ks[5], d)
        wo, bo = linear_params(ks[6], ks[7], d)
        return (wq, bq, wk, bk, wv, bv, wo, bo)

    # --- test 1: small shapes (single grid step per batch), broadcast causal mask
    B, S, D, H = 2, 8, 32, 8
    k1, k2, k3, k4, key = jax.random.split(key, 5)
    q = jax.random.normal(k1, (B, S, D), dtype=jnp.float32)
    kk = jax.random.normal(k2, (B, S, D), dtype=jnp.float32)
    v = jax.random.normal(k3, (B, S, D), dtype=jnp.float32)
    mask = jnp.tril(jnp.ones((S, S), jnp.float32))[None, None]          # (1,1,S,S)
    params = make_params(k4, D)

    out = jax.block_until_ready(multi_head_attention(q, kk, v, mask, params, H))
    ref = reference(q, kk, v, mask, params, H)
    assert out.shape == (B, S, D)
    assert jnp.allclose(out, ref, atol=3e-2, rtol=3e-2), "test1 mismatch"

    # --- test 2: exercises the tiled path (TQ = TK = 128 < S): multi-key-tile online
    #     softmax, scratch pl.ds slicing, staged-K reuse across t > 0, per-batch mask.
    B2, S2, D2, H2 = 2, 512, 256, 8
    k1, k2, k3, k4, key = jax.random.split(key, 5)
    q2 = jax.random.normal(k1, (B2, S2, D2), dtype=jnp.float32)
    kk2 = jax.random.normal(k2, (B2, S2, D2), dtype=jnp.float32)
    v2 = jax.random.normal(k3, (B2, S2, D2), dtype=jnp.float32)
    idx = jnp.arange(S2)
    causal = idx[None, :] <= idx[:, None]
    window = causal & (idx[None, :] > (idx[:, None] - 64))
    mask2 = jnp.stack([causal, window]).astype(jnp.float32)[:, None, :, :]  # (2,1,S,S)
    params2 = make_params(k4, D2)

    out2 = jax.block_until_ready(
        multi_head_attention(q2, kk2, v2, mask2, params2, H2, q_tile=128, k_tile=128))
    ref2 = reference(q2, kk2, v2, mask2, params2, H2)
    assert out2.shape == (B2, S2, D2)
    assert jnp.allclose(out2, ref2, atol=5e-2, rtol=5e-2), "test2 mismatch"

    print("KERNEL_OK")
</pallas_src>

<mosaic_0001>
module attributes {stable_mosaic.version = 11 : i64} {
  func.func @mha_kernel(%arg0: i32, %arg1: i32, %arg2: i32, %arg3: memref<1x8x32xbf16, #tpu.memory_space<vmem>>, %arg4: memref<1x8x32xbf16, #tpu.memory_space<vmem>>, %arg5: memref<1x1x8x8xi8, #tpu.memory_space<vmem>>, %arg6: memref<32x32xbf16, #tpu.memory_space<vmem>>, %arg7: memref<1x32xf32, #tpu.memory_space<vmem>>, %arg8: memref<32x32xbf16, #tpu.memory_space<vmem>>, %arg9: memref<1x32xf32, #tpu.memory_space<vmem>>, %arg10: memref<8x4x32xbf16, #tpu.memory_space<vmem>>, %arg11: memref<1x32xf32, #tpu.memory_space<vmem>>, %arg12: memref<1x8x32xf32, #tpu.memory_space<vmem>>, %arg13: memref<8x8x4xbf16, #tpu.memory_space<vmem>>, %arg14: memref<8x8x4xbf16, #tpu.memory_space<vmem>>, %arg15: memref<8x8x1xf32, #tpu.memory_space<vmem>>, %arg16: memref<8x8x1xf32, #tpu.memory_space<vmem>>, %arg17: memref<8x8x4xf32, #tpu.memory_space<vmem>>) attributes {dimension_semantics = [#tpu.dimension_semantics<parallel>, #tpu.dimension_semantics<arbitrary>, #tpu.dimension_semantics<arbitrary>], iteration_bounds = array<i64: 2, 1, 1>, scalar_prefetch = 0 : i64, scratch_operands = 5 : i64, tpu.core_type = #tpu.core_type<tc>, window_params = [{transform_indices = @transform_0, window_bounds = array<i64: 1, 8, 32>}, {transform_indices = @transform_1, window_bounds = array<i64: 1, 8, 32>}, {transform_indices = @transform_2, window_bounds = array<i64: 1, 1, 8, 8>}, {pipeline_mode = #tpu.pipeline_mode<synchronous>, transform_indices = @transform_3, window_bounds = array<i64: 32, 32>}, {pipeline_mode = #tpu.pipeline_mode<synchronous>, transform_indices = @transform_4, window_bounds = array<i64: 1, 32>}, {pipeline_mode = #tpu.pipeline_mode<synchronous>, transform_indices = @transform_5, window_bounds = array<i64: 32, 32>}, {pipeline_mode = #tpu.pipeline_mode<synchronous>, transform_indices = @transform_6, window_bounds = array<i64: 1, 32>}, {pipeline_mode = #tpu.pipeline_mode<synchronous>, transform_indices = @transform_7, window_bounds = array<i64: 8, 4, 32>}, {pipeline_mode = #tpu.pipeline_mode<synchronous>, transform_indices = @transform_8, window_bounds = array<i64: 1, 32>}, {transform_indices = @transform_9, window_bounds = array<i64: 1, 8, 32>}]} {
    %c0_i32 = arith.constant 0 : i32
    %0 = arith.cmpi eq, %arg1, %c0_i32 : i32
    %c0_i32_0 = arith.constant 0 : i32
    %1 = arith.cmpi eq, %arg2, %c0_i32_0 : i32
    %2 = arith.andi %0, %1 : i1
    %3 = arith.extui %2 : i1 to i32
    %c0_i32_1 = arith.constant 0 : i32
    %4 = arith.cmpi ne, %3, %c0_i32_1 : i32
    scf.if %4 {
      %c0_41 = arith.constant 0 : index
      %c0_42 = arith.constant 0 : index
      %c0_43 = arith.constant 0 : index
      %48 = vector.load %arg3[%c0_41, %c0_42, %c0_43] : memref<1x8x32xbf16, #tpu.memory_space<vmem>>, vector<1x8x32xbf16>
      %49 = vector.shape_cast %48 : vector<1x8x32xbf16> to vector<8x32xbf16>
      %c0_44 = arith.constant 0 : index
      %c0_45 = arith.constant 0 : index
      %50 = vector.load %arg6[%c0_44, %c0_45] : memref<32x32xbf16, #tpu.memory_space<vmem>>, vector<32x32xbf16>
      %cst_46 = arith.constant dense<0.000000e+00> : vector<8x32xf32>
      %51 = tpu.matmul %49, %50, %cst_46 {dimension_numbers = #tpu.dot_dimension_numbers<[1], [0], [0], [1], [0, 0, 1, 1], [], []>} : vector<8x32xbf16>, vector<32x32xbf16>, vector<8x32xf32> -> vector<8x32xf32>
      %c0_47 = arith.constant 0 : index
      %c0_48 = arith.constant 0 : index
      %52 = vector.load %arg7[%c0_47, %c0_48] : memref<1x32xf32, #tpu.memory_space<vmem>>, vector<1x32xf32>
      %53 = vector.broadcast %52 : vector<1x32xf32> to vector<8x32xf32>
      %54 = arith.addf %51, %53 : vector<8x32xf32>
      %55 = arith.truncf %54 : vector<8x32xf32> to vector<8x32xbf16>
      %56 = vector.extract_strided_slice %55 {offsets = [0, 0], sizes = [8, 4], strides = [1, 1]} : vector<8x32xbf16> to vector<8x4xbf16>
      %c0_49 = arith.constant 0 : index
      %c0_50 = arith.constant 0 : index
      %c0_51 = arith.constant 0 : index
      %57 = vector.load %arg13[%c0_49, %c0_50, %c0_51] : memref<8x8x4xbf16, #tpu.memory_space<vmem>>, vector<1x8x4xbf16>
      %58 = vector.shape_cast %57 : vector<1x8x4xbf16> to vector<8x4xbf16>
      %59 = vector.shape_cast %56 : vector<8x4xbf16> to vector<1x8x4xbf16>
      tpu.vector_store %arg13[%c0_49, %c0_50, %c0_51], %59 {strides = array<i32>} : memref<8x8x4xbf16, #tpu.memory_space<vmem>>, vector<1x8x4xbf16>,
      %60 = vector.extract_strided_slice %55 {offsets = [0, 4], sizes = [8, 4], strides = [1, 1]} : vector<8x32xbf16> to vector<8x4xbf16>
      %c1 = arith.constant 1 : index
      %c0_52 = arith.constant 0 : index
      %c0_53 = arith.constant 0 : index
      %61 = vector.load %arg13[%c1, %c0_52, %c0_53] : memref<8x8x4xbf16, #tpu.memory_space<vmem>>, vector<1x8x4xbf16>
      %62 = vector.shape_cast %61 : vector<1x8x4xbf16> to vector<8x4xbf16>
      %63 = vector.shape_cast %60 : vector<8x4xbf16> to vector<1x8x4xbf16>
      tpu.vector_store %arg13[%c1, %c0_52, %c0_53], %63 {strides = array<i32>} : memref<8x8x4xbf16, #tpu.memory_space<vmem>>, vector<1x8x4xbf16>,
      %64 = vector.extract_strided_slice %55 {offsets = [0, 8], sizes = [8, 4], strides = [1, 1]} : vector<8x32xbf16> to vector<8x4xbf16>
      %c2 = arith.constant 2 : index
      %c0_54 = arith.constant 0 : index
      %c0_55 = arith.constant 0 : index
      %65 = vector.load %arg13[%c2, %c0_54, %c0_55] : memref<8x8x4xbf16, #tpu.memory_space<vmem>>, vector<1x8x4xbf16>
      %66 = vector.shape_cast %65 : vector<1x8x4xbf16> to vector<8x4xbf16>
      %67 = vector.shape_cast %64 : vector<8x4xbf16> to vector<1x8x4xbf16>
      tpu.vector_store %arg13[%c2, %c0_54, %c0_55], %67 {strides = array<i32>} : memref<8x8x4xbf16, #tpu.memory_space<vmem>>, vector<1x8x4xbf16>,
      %68 = vector.extract_strided_slice %55 {offsets = [0, 12], sizes = [8, 4], strides = [1, 1]} : vector<8x32xbf16> to vector<8x4xbf16>
      %c3 = arith.constant 3 : index
      %c0_56 = arith.constant 0 : index
      %c0_57 = arith.constant 0 : index
      %69 = vector.load %arg13[%c3, %c0_56, %c0_57] : memref<8x8x4xbf16, #tpu.memory_space<vmem>>, vector<1x8x4xbf16>
      %70 = vector.shape_cast %69 : vector<1x8x4xbf16> to vector<8x4xbf16>
      %71 = vector.shape_cast %68 : vector<8x4xbf16> to vector<1x8x4xbf16>
      tpu.vector_store %arg13[%c3, %c0_56, %c0_57], %71 {strides = array<i32>} : memref<8x8x4xbf16, #tpu.memory_space<vmem>>, vector<1x8x4xbf16>,
      %72 = vector.extract_strided_slice %55 {offsets = [0, 16], sizes = [8, 4], strides = [1, 1]} : vector<8x32xbf16> to vector<8x4xbf16>
      %c4 = arith.constant 4 : index
      %c0_58 = arith.constant 0 : index
      %c0_59 = arith.constant 0 : index
      %73 = vector.load %arg13[%c4, %c0_58, %c0_59] : memref<8x8x4xbf16, #tpu.memory_space<vmem>>, vector<1x8x4xbf16>
      %74 = vector.shape_cast %73 : vector<1x8x4xbf16> to vector<8x4xbf16>
      %75 = vector.shape_cast %72 : vector<8x4xbf16> to vector<1x8x4xbf16>
      tpu.vector_store %arg13[%c4, %c0_58, %c0_59], %75 {strides = array<i32>} : memref<8x8x4xbf16, #tpu.memory_space<vmem>>, vector<1x8x4xbf16>,
      %76 = vector.extract_strided_slice %55 {offsets = [0, 20], sizes = [8, 4], strides = [1, 1]} : vector<8x32xbf16> to vector<8x4xbf16>
      %c5 = arith.constant 5 : index
      %c0_60 = arith.constant 0 : index
      %c0_61 = arith.constant 0 : index
      %77 = vector.load %arg13[%c5, %c0_60, %c0_61] : memref<8x8x4xbf16, #tpu.memory_space<vmem>>, vector<1x8x4xbf16>
      %78 = vector.shape_cast %77 : vector<1x8x4xbf16> to vector<8x4xbf16>
      %79 = vector.shape_cast %76 : vector<8x4xbf16> to vector<1x8x4xbf16>
      tpu.vector_store %arg13[%c5, %c0_60, %c0_61], %79 {strides = array<i32>} : memref<8x8x4xbf16, #tpu.memory_space<vmem>>, vector<1x8x4xbf16>,
      %80 = vector.extract_strided_slice %55 {offsets = [0, 24], sizes = [8, 4], strides = [1, 1]} : vector<8x32xbf16> to vector<8x4xbf16>
      %c6 = arith.constant 6 : index
      %c0_62 = arith.constant 0 : index
      %c0_63 = arith.constant 0 : index
      %81 = vector.load %arg13[%c6, %c0_62, %c0_63] : memref<8x8x4xbf16, #tpu.memory_space<vmem>>, vector<1x8x4xbf16>
      %82 = vector.shape_cast %81 : vector<1x8x4xbf16> to vector<8x4xbf16>
      %83 = vector.shape_cast %80 : vector<8x4xbf16> to vector<1x8x4xbf16>
      tpu.vector_store %arg13[%c6, %c0_62, %c0_63], %83 {strides = array<i32>} : memref<8x8x4xbf16, #tpu.memory_space<vmem>>, vector<1x8x4xbf16>,
      %84 = vector.extract_strided_slice %55 {offsets = [0, 28], sizes = [8, 4], strides = [1, 1]} : vector<8x32xbf16> to vector<8x4xbf16>
      %c7 = arith.constant 7 : index
      %c0_64 = arith.constant 0 : index
      %c0_65 = arith.constant 0 : index
      %85 = vector.load %arg13[%c7, %c0_64, %c0_65] : memref<8x8x4xbf16, #tpu.memory_space<vmem>>, vector<1x8x4xbf16>
      %86 = vector.shape_cast %85 : vector<1x8x4xbf16> to vector<8x4xbf16>
      %87 = vector.shape_cast %84 : vector<8x4xbf16> to vector<1x8x4xbf16>
      tpu.vector_store %arg13[%c7, %c0_64, %c0_65], %87 {strides = array<i32>} : memref<8x8x4xbf16, #tpu.memory_space<vmem>>, vector<1x8x4xbf16>,
      %c0_66 = arith.constant 0 : index
      %c0_67 = arith.constant 0 : index
      %c0_68 = arith.constant 0 : index
      %88 = vector.load %arg4[%c0_66, %c0_67, %c0_68] : memref<1x8x32xbf16, #tpu.memory_space<vmem>>, vector<1x8x32xbf16>
      %89 = vector.shape_cast %88 : vector<1x8x32xbf16> to vector<8x32xbf16>
      %c0_69 = arith.constant 0 : index
      %c0_70 = arith.constant 0 : index
      %90 = vector.load %arg8[%c0_69, %c0_70] : memref<32x32xbf16, #tpu.memory_space<vmem>>, vector<32x32xbf16>
      %cst_71 = arith.constant dense<0.000000e+00> : vector<8x32xf32>
      %91 = tpu.matmul %89, %90, %cst_71 {dimension_numbers = #tpu.dot_dimension_numbers<[1], [0], [0], [1], [0, 0, 1, 1], [], []>} : vector<8x32xbf16>, vector<32x32xbf16>, vector<8x32xf32> -> vector<8x32xf32>
      %c0_72 = arith.constant 0 : index
      %c0_73 = arith.constant 0 : index
      %92 = vector.load %arg9[%c0_72, %c0_73] : memref<1x32xf32, #tpu.memory_space<vmem>>, vector<1x32xf32>
      %93 = vector.broadcast %92 : vector<1x32xf32> to vector<8x32xf32>
      %94 = arith.addf %91, %93 : vector<8x32xf32>
      %95 = arith.truncf %94 : vector<8x32xf32> to vector<8x32xbf16>
      %96 = vector.extract_strided_slice %95 {offsets = [0, 0], sizes = [8, 4], strides = [1, 1]} : vector<8x32xbf16> to vector<8x4xbf16>
      %c0_74 = arith.constant 0 : index
      %c0_75 = arith.constant 0 : index
      %c0_76 = arith.constant 0 : index
      %97 = vector.load %arg14[%c0_74, %c0_75, %c0_76] : memref<8x8x4xbf16, #tpu.memory_space<vmem>>, vector<1x8x4xbf16>
      %98 = vector.shape_cast %97 : vector<1x8x4xbf16> to vector<8x4xbf16>
      %99 = vector.shape_cast %96 : vector<8x4xbf16> to vector<1x8x4xbf16>
      tpu.vector_store %arg14[%c0_74, %c0_75, %c0_76], %99 {strides = array<i32>} : memref<8x8x4xbf16, #tpu.memory_space<vmem>>, vector<1x8x4xbf16>,
      %100 = vector.extract_strided_slice %95 {offsets = [0, 4], sizes = [8, 4], strides = [1, 1]} : vector<8x32xbf16> to vector<8x4xbf16>
      %c1_77 = arith.constant 1 : index
      %c0_78 = arith.constant 0 : index
      %c0_79 = arith.constant 0 : index
      %101 = vector.load %arg14[%c1_77, %c0_78, %c0_79] : memref<8x8x4xbf16, #tpu.memory_space<vmem>>, vector<1x8x4xbf16>
      %102 = vector.shape_cast %101 : vector<1x8x4xbf16> to vector<8x4xbf16>
      %103 = vector.shape_cast %100 : vector<8x4xbf16> to vector<1x8x4xbf16>
      tpu.vector_store %arg14[%c1_77, %c0_78, %c0_79], %103 {strides = array<i32>} : memref<8x8x4xbf16, #tpu.memory_space<vmem>>, vector<1x8x4xbf16>,
      %104 = vector.extract_strided_slice %95 {offsets = [0, 8], sizes = [8, 4], strides = [1, 1]} : vector<8x32xbf16> to vector<8x4xbf16>
      %c2_80 = arith.constant 2 : index
      %c0_81 = arith.constant 0 : index
      %c0_82 = arith.constant 0 : index
      %105 = vector.load %arg14[%c2_80, %c0_81, %c0_82] : memref<8x8x4xbf16, #tpu.memory_space<vmem>>, vector<1x8x4xbf16>
      %106 = vector.shape_cast %105 : vector<1x8x4xbf16> to vector<8x4xbf16>
      %107 = vector.shape_cast %104 : vector<8x4xbf16> to vector<1x8x4xbf16>
      tpu.vector_store %arg14[%c2_80, %c0_81, %c0_82], %107 {strides = array<i32>} : memref<8x8x4xbf16, #tpu.memory_space<vmem>>, vector<1x8x4xbf16>,
      %108 = vector.extract_strided_slice %95 {offsets = [0, 12], sizes = [8, 4], strides = [1, 1]} : vector<8x32xbf16> to vector<8x4xbf16>
      %c3_83 = arith.constant 3 : index
      %c0_84 = arith.constant 0 : index
      %c0_85 = arith.constant 0 : index
      %109 = vector.load %arg14[%c3_83, %c0_84, %c0_85] : memref<8x8x4xbf16, #tpu.memory_space<vmem>>, vector<1x8x4xbf16>
      %110 = vector.shape_cast %109 : vector<1x8x4xbf16> to vector<8x4xbf16>
      %111 = vector.shape_cast %108 : vector<8x4xbf16> to vector<1x8x4xbf16>
      tpu.vector_store %arg14[%c3_83, %c0_84, %c0_85], %111 {strides = array<i32>} : memref<8x8x4xbf16, #tpu.memory_space<vmem>>, vector<1x8x4xbf16>,
      %112 = vector.extract_strided_slice %95 {offsets = [0, 16], sizes = [8, 4], strides = [1, 1]} : vector<8x32xbf16> to vector<8x4xbf16>
      %c4_86 = arith.constant 4 : index
      %c0_87 = arith.constant 0 : index
      %c0_88 = arith.constant 0 : index
      %113 = vector.load %arg14[%c4_86, %c0_87, %c0_88] : memref<8x8x4xbf16, #tpu.memory_space<vmem>>, vector<1x8x4xbf16>
      %114 = vector.shape_cast %113 : vector<1x8x4xbf16> to vector<8x4xbf16>
      %115 = vector.shape_cast %112 : vector<8x4xbf16> to vector<1x8x4xbf16>
      tpu.vector_store %arg14[%c4_86, %c0_87, %c0_88], %115 {strides = array<i32>} : memref<8x8x4xbf16, #tpu.memory_space<vmem>>, vector<1x8x4xbf16>,
      %116 = vector.extract_strided_slice %95 {offsets = [0, 20], sizes = [8, 4], strides = [1, 1]} : vector<8x32xbf16> to vector<8x4xbf16>
      %c5_89 = arith.constant 5 : index
      %c0_90 = arith.constant 0 : index
      %c0_91 = arith.constant 0 : index
      %117 = vector.load %arg14[%c5_89, %c0_90, %c0_91] : memref<8x8x4xbf16, #tpu.memory_space<vmem>>, vector<1x8x4xbf16>
      %118 = vector.shape_cast %117 : vector<1x8x4xbf16> to vector<8x4xbf16>
      %119 = vector.shape_cast %116 : vector<8x4xbf16> to vector<1x8x4xbf16>
      tpu.vector_store %arg14[%c5_89, %c0_90, %c0_91], %119 {strides = array<i32>} : memref<8x8x4xbf16, #tpu.memory_space<vmem>>, vector<1x8x4xbf16>,
      %120 = vector.extract_strided_slice %95 {offsets = [0, 24], sizes = [8, 4], strides = [1, 1]} : vector<8x32xbf16> to vector<8x4xbf16>
      %c6_92 = arith.constant 6 : index
      %c0_93 = arith.constant 0 : index
      %c0_94 = arith.constant 0 : index
      %121 = vector.load %arg14[%c6_92, %c0_93, %c0_94] : memref<8x8x4xbf16, #tpu.memory_space<vmem>>, vector<1x8x4xbf16>
      %122 = vector.shape_cast %121 : vector<1x8x4xbf16> to vector<8x4xbf16>
      %123 = vector.shape_cast %120 : vector<8x4xbf16> to vector<1x8x4xbf16>
      tpu.vector_store %arg14[%c6_92, %c0_93, %c0_94], %123 {strides = array<i32>} : memref<8x8x4xbf16, #tpu.memory_space<vmem>>, vector<1x8x4xbf16>,
      %124 = vector.extract_strided_slice %95 {offsets = [0, 28], sizes = [8, 4], strides = [1, 1]} : vector<8x32xbf16> to vector<8x4xbf16>
      %c7_95 = arith.constant 7 : index
      %c0_96 = arith.constant 0 : index
      %c0_97 = arith.constant 0 : index
      %125 = vector.load %arg14[%c7_95, %c0_96, %c0_97] : memref<8x8x4xbf16, #tpu.memory_space<vmem>>, vector<1x8x4xbf16>
      %126 = vector.shape_cast %125 : vector<1x8x4xbf16> to vector<8x4xbf16>
      %127 = vector.shape_cast %124 : vector<8x4xbf16> to vector<1x8x4xbf16>
      tpu.vector_store %arg14[%c7_95, %c0_96, %c0_97], %127 {strides = array<i32>} : memref<8x8x4xbf16, #tpu.memory_space<vmem>>, vector<1x8x4xbf16>,
    } else {
    }
    %c0_i32_2 = arith.constant 0 : i32
    %5 = arith.cmpi eq, %arg2, %c0_i32_2 : i32
    %6 = arith.extui %5 : i1 to i32
    %c0_i32_3 = arith.constant 0 : i32
    %7 = arith.cmpi ne, %6, %c0_i32_3 : i32
    scf.if %7 {
      %cst_41 = arith.constant 0xFF800000 : f32
      %48 = vector.broadcast %cst_41 : f32 to vector<8x8x1xf32>
      %c0_42 = arith.constant 0 : index
      %c0_43 = arith.constant 0 : index
      %c0_44 = arith.constant 0 : index
      %49 = vector.load %arg15[%c0_42, %c0_43, %c0_44] : memref<8x8x1xf32, #tpu.memory_space<vmem>>, vector<8x8x1xf32>
      tpu.vector_store %arg15[%c0_42, %c0_43, %c0_44], %48 {strides = array<i32>} : memref<8x8x1xf32, #tpu.memory_space<vmem>>, vector<8x8x1xf32>,
      %cst_45 = arith.constant 0.000000e+00 : f32
      %50 = vector.broadcast %cst_45 : f32 to vector<8x8x1xf32>
      %c0_46 = arith.constant 0 : index
      %c0_47 = arith.constant 0 : index
      %c0_48 = arith.constant 0 : index
      %51 = vector.load %arg16[%c0_46, %c0_47, %c0_48] : memref<8x8x1xf32, #tpu.memory_space<vmem>>, vector<8x8x1xf32>
      tpu.vector_store %arg16[%c0_46, %c0_47, %c0_48], %50 {strides = array<i32>} : memref<8x8x1xf32, #tpu.memory_space<vmem>>, vector<8x8x1xf32>,
      %cst_49 = arith.constant 0.000000e+00 : f32
      %52 = vector.broadcast %cst_49 : f32 to vector<8x8x4xf32>
      %c0_50 = arith.constant 0 : index
      %c0_51 = arith.constant 0 : index
      %c0_52 = arith.constant 0 : index
      %53 = vector.load %arg17[%c0_50, %c0_51, %c0_52] : memref<8x8x4xf32, #tpu.memory_space<vmem>>, vector<8x8x4xf32>
      tpu.vector_store %arg17[%c0_50, %c0_51, %c0_52], %52 {strides = array<i32>} : memref<8x8x4xf32, #tpu.memory_space<vmem>>, vector<8x8x4xf32>,
    } else {
    }
    %c0 = arith.constant 0 : index
    %c0_4 = arith.constant 0 : index
    %c0_5 = arith.constant 0 : index
    %8 = vector.load %arg13[%c0, %c0_4, %c0_5] : memref<8x8x4xbf16, #tpu.memory_space<vmem>>, vector<8x8x4xbf16>
    %c0_6 = arith.constant 0 : index
    %c0_7 = arith.constant 0 : index
    %c0_8 = arith.constant 0 : index
    %9 = vector.load %arg13[%c0_6, %c0_7, %c0_8] : memref<8x8x4xbf16, #tpu.memory_space<vmem>>, vector<8x8x4xbf16>
    %c0_9 = arith.constant 0 : index
    %c0_10 = arith.constant 0 : index
    %c0_11 = arith.constant 0 : index
    %10 = vector.load %arg14[%c0_9, %c0_10, %c0_11] : memref<8x8x4xbf16, #tpu.memory_space<vmem>>, vector<8x8x4xbf16>
    "tpu.trace_start"() <{level = 10 : i32, message = "hqd,hkd->hqk"}> : () -> ()
    %cst = arith.constant dense<0.000000e+00> : vector<8x8x8xf32>
    %11 = tpu.matmul %8, %9, %cst {dimension_numbers = #tpu.dot_dimension_numbers<[2], [2], [1], [1], [0, 0, 0, 1, 1, 1], [0], [0]>} : vector<8x8x4xbf16>, vector<8x8x4xbf16>, vector<8x8x8xf32> -> vector<8x8x8xf32>
    "tpu.trace_stop"() : () -> ()
    %c0_12 = arith.constant 0 : index
    %c0_13 = arith.constant 0 : index
    %c0_14 = arith.constant 0 : index
    %c0_15 = arith.constant 0 : index
    %12 = vector.load %arg5[%c0_12, %c0_13, %c0_14, %c0_15] : memref<1x1x8x8xi8, #tpu.memory_space<vmem>>, vector<1x1x8x8xi8>
    %13 = vector.shape_cast %12 : vector<1x1x8x8xi8> to vector<8x8xi8>
    %14 = arith.sitofp %13 : vector<8x8xi8> to vector<8x8xf32>
    %cst_16 = arith.constant 1.000000e+00 : f32
    %15 = vector.broadcast %cst_16 : f32 to vector<8x8xf32>
    %16 = arith.subf %14, %15 : vector<8x8xf32>
    %cst_17 = arith.constant 1.000000e+09 : f32
    %17 = vector.broadcast %cst_17 : f32 to vector<8x8xf32>
    %18 = arith.mulf %16, %17 : vector<8x8xf32>
    %19 = vector.shape_cast %18 : vector<8x8xf32> to vector<1x8x8xf32>
    %20 = vector.broadcast %19 : vector<1x8x8xf32> to vector<8x8x8xf32>
    %21 = arith.addf %11, %20 : vector<8x8x8xf32>
    %c0_18 = arith.constant 0 : index
    %c0_19 = arith.constant 0 : index
    %c0_20 = arith.constant 0 : index
    %22 = vector.load %arg15[%c0_18, %c0_19, %c0_20] : memref<8x8x1xf32, #tpu.memory_space<vmem>>, vector<8x8x1xf32>
    %cst_21 = arith.constant dense<0xFF800000> : vector<8x8xf32>
    %23 = vector.multi_reduction <maximumf>, %21, %cst_21 [2] : vector<8x8x8xf32> to vector<8x8xf32>
    %24 = vector.shape_cast %23 : vector<8x8xf32> to vector<8x8x1xf32>
    %25 = arith.maximumf %22, %24 : vector<8x8x1xf32>
    %26 = arith.subf %22, %25 : vector<8x8x1xf32>
    %27 = math.exp %26 : vector<8x8x1xf32>
    %28 = vector.broadcast %25 : vector<8x8x1xf32> to vector<8x8x8xf32>
    %29 = arith.subf %21, %28 : vector<8x8x8xf32>
    %30 = math.exp %29 : vector<8x8x8xf32>
    %c0_22 = arith.constant 0 : index
    %c0_23 = arith.constant 0 : index
    %c0_24 = arith.constant 0 : index
    %31 = vector.load %arg16[%c0_22, %c0_23, %c0_24] : memref<8x8x1xf32, #tpu.memory_space<vmem>>, vector<8x8x1xf32>
    %32 = arith.mulf %27, %31 : vector<8x8x1xf32>
    %cst_25 = arith.constant dense<0.000000e+00> : vector<8x8xf32>
    %33 = vector.multi_reduction <add>, %30, %cst_25 [2] : vector<8x8x8xf32> to vector<8x8xf32>
    %34 = vector.shape_cast %33 : vector<8x8xf32> to vector<8x8x1xf32>
    %35 = arith.addf %32, %34 : vector<8x8x1xf32>
    %c0_26 = arith.constant 0 : index
    %c0_27 = arith.constant 0 : index
    %c0_28 = arith.constant 0 : index
    %36 = vector.load %arg16[%c0_26, %c0_27, %c0_28] : memref<8x8x1xf32, #tpu.memory_space<vmem>>, vector<8x8x1xf32>
    tpu.vector_store %arg16[%c0_26, %c0_27, %c0_28], %35 {strides = array<i32>} : memref<8x8x1xf32, #tpu.memory_space<vmem>>, vector<8x8x1xf32>,
    %c0_29 = arith.constant 0 : index
    %c0_30 = arith.constant 0 : index
    %c0_31 = arith.constant 0 : index
    %37 = vector.load %arg17[%c0_29, %c0_30, %c0_31] : memref<8x8x4xf32, #tpu.memory_space<vmem>>, vector<8x8x4xf32>
    %38 = vector.broadcast %27 : vector<8x8x1xf32> to vector<8x8x4xf32>
    %39 = arith.mulf %38, %37 : vector<8x8x4xf32>
    %40 = arith.truncf %30 : vector<8x8x8xf32> to vector<8x8x8xbf16>
    "tpu.trace_start"() <{level = 10 : i32, message = "hqk,hkd->hqd"}> : () -> ()
    %cst_32 = arith.constant dense<0.000000e+00> : vector<8x8x4xf32>
    %41 = tpu.matmul %40, %10, %cst_32 {dimension_numbers = #tpu.dot_dimension_numbers<[2], [1], [1], [2], [0, 0, 0, 1, 1, 2], [0], [0]>} : vector<8x8x8xbf16>, vector<8x8x4xbf16>, vector<8x8x4xf32> -> vector<8x8x4xf32>
    "tpu.trace_stop"() : () -> ()
    %42 = arith.addf %39, %41 : vector<8x8x4xf32>
    %c0_33 = arith.constant 0 : index
    %c0_34 = arith.constant 0 : index
    %c0_35 = arith.constant 0 : index
    %43 = vector.load %arg17[%c0_33, %c0_34, %c0_35] : memref<8x8x4xf32, #tpu.memory_space<vmem>>, vector<8x8x4xf32>
    tpu.vector_store %arg17[%c0_33, %c0_34, %c0_35], %42 {strides = array<i32>} : memref<8x8x4xf32, #tpu.memory_space<vmem>>, vector<8x8x4xf32>,
    %c0_36 = arith.constant 0 : index
    %c0_37 = arith.constant 0 : index
    %c0_38 = arith.constant 0 : index
    %44 = vector.load %arg15[%c0_36, %c0_37, %c0_38] : memref<8x8x1xf32, #tpu.memory_space<vmem>>, vector<8x8x1xf32>
    tpu.vector_store %arg15[%c0_36, %c0_37, %c0_38], %25 {strides = array<i32>} : memref<8x8x1xf32, #tpu.memory_space<vmem>>, vector<8x8x1xf32>,
    %c0_i32_39 = arith.constant 0 : i32
    %45 = arith.cmpi eq, %arg2, %c0_i32_39 : i32
    %46 = arith.extui %45 : i1 to i32
    %c0_i32_40 = arith.constant 0 : i32
    %47 = arith.cmpi ne, %46, %c0_i32_40 : i32
    scf.if %47 {
      %c0_41 = arith.constant 0 : index
      %c0_42 = arith.constant 0 : index
      %c0_43 = arith.constant 0 : index
      %48 = vector.load %arg16[%c0_41, %c0_42, %c0_43] : memref<8x8x1xf32, #tpu.memory_space<vmem>>, vector<8x8x1xf32>
      %49 = tpu.reciprocal %48 {approx = true} : vector<8x8x1xf32> -> vector<8x8x1xf32>
      %c0_44 = arith.constant 0 : index
      %c0_45 = arith.constant 0 : index
      %c0_46 = arith.constant 0 : index
      %50 = vector.load %arg17[%c0_44, %c0_45, %c0_46] : memref<8x8x4xf32, #tpu.memory_space<vmem>>, vector<8x8x4xf32>
      %51 = vector.broadcast %49 : vector<8x8x1xf32> to vector<8x8x4xf32>
      %52 = arith.mulf %50, %51 : vector<8x8x4xf32>
      %53 = arith.truncf %52 : vector<8x8x4xf32> to vector<8x8x4xbf16>
      %54 = vector.extract_strided_slice %53 {offsets = [0, 0, 0], sizes = [1, 8, 4], strides = [1, 1, 1]} : vector<8x8x4xbf16> to vector<1x8x4xbf16>
      %55 = vector.shape_cast %54 : vector<1x8x4xbf16> to vector<8x4xbf16>
      %c0_47 = arith.constant 0 : index
      %c0_48 = arith.constant 0 : index
      %c0_49 = arith.constant 0 : index
      %56 = vector.load %arg10[%c0_47, %c0_48, %c0_49] : memref<8x4x32xbf16, #tpu.memory_space<vmem>>, vector<1x4x32xbf16>
      %57 = vector.shape_cast %56 : vector<1x4x32xbf16> to vector<4x32xbf16>
      %cst_50 = arith.constant dense<0.000000e+00> : vector<8x32xf32>
      %58 = tpu.matmul %55, %57, %cst_50 {dimension_numbers = #tpu.dot_dimension_numbers<[1], [0], [0], [1], [0, 0, 1, 1], [], []>} : vector<8x4xbf16>, vector<4x32xbf16>, vector<8x32xf32> -> vector<8x32xf32>
      %59 = vector.extract_strided_slice %53 {offsets = [1, 0, 0], sizes = [1, 8, 4], strides = [1, 1, 1]} : vector<8x8x4xbf16> to vector<1x8x4xbf16>
      %60 = vector.shape_cast %59 : vector<1x8x4xbf16> to vector<8x4xbf16>
      %c1 = arith.constant 1 : index
      %c0_51 = arith.constant 0 : index
      %c0_52 = arith.constant 0 : index
      %61 = vector.load %arg10[%c1, %c0_51, %c0_52] : memref<8x4x32xbf16, #tpu.memory_space<vmem>>, vector<1x4x32xbf16>
      %62 = vector.shape_cast %61 : vector<1x4x32xbf16> to vector<4x32xbf16>
      %cst_53 = arith.constant dense<0.000000e+00> : vector<8x32xf32>
      %63 = tpu.matmul %60, %62, %cst_53 {dimension_numbers = #tpu.dot_dimension_numbers<[1], [0], [0], [1], [0, 0, 1, 1], [], []>} : vector<8x4xbf16>, vector<4x32xbf16>, vector<8x32xf32> -> vector<8x32xf32>
      %64 = arith.addf %58, %63 : vector<8x32xf32>
      %65 = vector.extract_strided_slice %53 {offsets = [2, 0, 0], sizes = [1, 8, 4], strides = [1, 1, 1]} : vector<8x8x4xbf16> to vector<1x8x4xbf16>
      %66 = vector.shape_cast %65 : vector<1x8x4xbf16> to vector<8x4xbf16>
      %c2 = arith.constant 2 : index
      %c0_54 = arith.constant 0 : index
      %c0_55 = arith.constant 0 : index
      %67 = vector.load %arg10[%c2, %c0_54, %c0_55] : memref<8x4x32xbf16, #tpu.memory_space<vmem>>, vector<1x4x32xbf16>
      %68 = vector.shape_cast %67 : vector<1x4x32xbf16> to vector<4x32xbf16>
      %cst_56 = arith.constant dense<0.000000e+00> : vector<8x32xf32>
      %69 = tpu.matmul %66, %68, %cst_56 {dimension_numbers = #tpu.dot_dimension_numbers<[1], [0], [0], [1], [0, 0, 1, 1], [], []>} : vector<8x4xbf16>, vector<4x32xbf16>, vector<8x32xf32> -> vector<8x32xf32>
      %70 = arith.addf %64, %69 : vector<8x32xf32>
      %71 = vector.extract_strided_slice %53 {offsets = [3, 0, 0], sizes = [1, 8, 4], strides = [1, 1, 1]} : vector<8x8x4xbf16> to vector<1x8x4xbf16>
      %72 = vector.shape_cast %71 : vector<1x8x4xbf16> to vector<8x4xbf16>
      %c3 = arith.constant 3 : index
      %c0_57 = arith.constant 0 : index
      %c0_58 = arith.constant 0 : index
      %73 = vector.load %arg10[%c3, %c0_57, %c0_58] : memref<8x4x32xbf16, #tpu.memory_space<vmem>>, vector<1x4x32xbf16>
      %74 = vector.shape_cast %73 : vector<1x4x32xbf16> to vector<4x32xbf16>
      %cst_59 = arith.constant dense<0.000000e+00> : vector<8x32xf32>
      %75 = tpu.matmul %72, %74, %cst_59 {dimension_numbers = #tpu.dot_dimension_numbers<[1], [0], [0], [1], [0, 0, 1, 1], [], []>} : vector<8x4xbf16>, vector<4x32xbf16>, vector<8x32xf32> -> vector<8x32xf32>
      %76 = arith.addf %70, %75 : vector<8x32xf32>
      %77 = vector.extract_strided_slice %53 {offsets = [4, 0, 0], sizes = [1, 8, 4], strides = [1, 1, 1]} : vector<8x8x4xbf16> to vector<1x8x4xbf16>
      %78 = vector.shape_cast %77 : vector<1x8x4xbf16> to vector<8x4xbf16>
      %c4 = arith.constant 4 : index
      %c0_60 = arith.constant 0 : index
      %c0_61 = arith.constant 0 : index
      %79 = vector.load %arg10[%c4, %c0_60, %c0_61] : memref<8x4x32xbf16, #tpu.memory_space<vmem>>, vector<1x4x32xbf16>
      %80 = vector.shape_cast %79 : vector<1x4x32xbf16> to vector<4x32xbf16>
      %cst_62 = arith.constant dense<0.000000e+00> : vector<8x32xf32>
      %81 = tpu.matmul %78, %80, %cst_62 {dimension_numbers = #tpu.dot_dimension_numbers<[1], [0], [0], [1], [0, 0, 1, 1], [], []>} : vector<8x4xbf16>, vector<4x32xbf16>, vector<8x32xf32> -> vector<8x32xf32>
      %82 = arith.addf %76, %81 : vector<8x32xf32>
      %83 = vector.extract_strided_slice %53 {offsets = [5, 0, 0], sizes = [1, 8, 4], strides = [1, 1, 1]} : vector<8x8x4xbf16> to vector<1x8x4xbf16>
      %84 = vector.shape_cast %83 : vector<1x8x4xbf16> to vector<8x4xbf16>
      %c5 = arith.constant 5 : index
      %c0_63 = arith.constant 0 : index
      %c0_64 = arith.constant 0 : index
      %85 = vector.load %arg10[%c5, %c0_63, %c0_64] : memref<8x4x32xbf16, #tpu.memory_space<vmem>>, vector<1x4x32xbf16>
      %86 = vector.shape_cast %85 : vector<1x4x32xbf16> to vector<4x32xbf16>
      %cst_65 = arith.constant dense<0.000000e+00> : vector<8x32xf32>
      %87 = tpu.matmul %84, %86, %cst_65 {dimension_numbers = #tpu.dot_dimension_numbers<[1], [0], [0], [1], [0, 0, 1, 1], [], []>} : vector<8x4xbf16>, vector<4x32xbf16>, vector<8x32xf32> -> vector<8x32xf32>
      %88 = arith.addf %82, %87 : vector<8x32xf32>
      %89 = vector.extract_strided_slice %53 {offsets = [6, 0, 0], sizes = [1, 8, 4], strides = [1, 1, 1]} : vector<8x8x4xbf16> to vector<1x8x4xbf16>
      %90 = vector.shape_cast %89 : vector<1x8x4xbf16> to vector<8x4xbf16>
      %c6 = arith.constant 6 : index
      %c0_66 = arith.constant 0 : index
      %c0_67 = arith.constant 0 : index
      %91 = vector.load %arg10[%c6, %c0_66, %c0_67] : memref<8x4x32xbf16, #tpu.memory_space<vmem>>, vector<1x4x32xbf16>
      %92 = vector.shape_cast %91 : vector<1x4x32xbf16> to vector<4x32xbf16>
      %cst_68 = arith.constant dense<0.000000e+00> : vector<8x32xf32>
      %93 = tpu.matmul %90, %92, %cst_68 {dimension_numbers = #tpu.dot_dimension_numbers<[1], [0], [0], [1], [0, 0, 1, 1], [], []>} : vector<8x4xbf16>, vector<4x32xbf16>, vector<8x32xf32> -> vector<8x32xf32>
      %94 = arith.addf %88, %93 : vector<8x32xf32>
      %95 = vector.extract_strided_slice %53 {offsets = [7, 0, 0], sizes = [1, 8, 4], strides = [1, 1, 1]} : vector<8x8x4xbf16> to vector<1x8x4xbf16>
      %96 = vector.shape_cast %95 : vector<1x8x4xbf16> to vector<8x4xbf16>
      %c7 = arith.constant 7 : index
      %c0_69 = arith.constant 0 : index
      %c0_70 = arith.constant 0 : index
      %97 = vector.load %arg10[%c7, %c0_69, %c0_70] : memref<8x4x32xbf16, #tpu.memory_space<vmem>>, vector<1x4x32xbf16>
      %98 = vector.shape_cast %97 : vector<1x4x32xbf16> to vector<4x32xbf16>
      %cst_71 = arith.constant dense<0.000000e+00> : vector<8x32xf32>
      %99 = tpu.matmul %96, %98, %cst_71 {dimension_numbers = #tpu.dot_dimension_numbers<[1], [0], [0], [1], [0, 0, 1, 1], [], []>} : vector<8x4xbf16>, vector<4x32xbf16>, vector<8x32xf32> -> vector<8x32xf32>
      %100 = arith.addf %94, %99 : vector<8x32xf32>
      %c0_72 = arith.constant 0 : index
      %c0_73 = arith.constant 0 : index
      %101 = vector.load %arg11[%c0_72, %c0_73] : memref<1x32xf32, #tpu.memory_space<vmem>>, vector<1x32xf32>
      %102 = vector.broadcast %101 : vector<1x32xf32> to vector<8x32xf32>
      %103 = arith.addf %100, %102 : vector<8x32xf32>
      %c0_74 = arith.constant 0 : index
      %c0_75 = arith.constant 0 : index
      %c0_76 = arith.constant 0 : index
      %104 = vector.load %arg12[%c0_74, %c0_75, %c0_76] : memref<1x8x32xf32, #tpu.memory_space<vmem>>, vector<1x8x32xf32>
      %105 = vector.shape_cast %104 : vector<1x8x32xf32> to vector<8x32xf32>
      %106 = vector.shape_cast %103 : vector<8x32xf32> to vector<1x8x32xf32>
      tpu.vector_store %arg12[%c0_74, %c0_75, %c0_76], %106 {strides = array<i32>} : memref<1x8x32xf32, #tpu.memory_space<vmem>>, vector<1x8x32xf32>,
    } else {
    }
    return
  }
  func.func @transform_0(%arg0: i32, %arg1: i32, %arg2: i32) -> (i32, i32, i32) {
    %c0_i32 = arith.constant 0 : i32
    %c0_i32_0 = arith.constant 0 : i32
    %c0_i32_1 = arith.constant 0 : i32
    return %arg0, %c0_i32, %c0_i32_0 : i32, i32, i32
  }
  func.func @transform_1(%arg0: i32, %arg1: i32, %arg2: i32) -> (i32, i32, i32) {
    %c0_i32 = arith.constant 0 : i32
    %c0_i32_0 = arith.constant 0 : i32
    %c0_i32_1 = arith.constant 0 : i32
    return %arg0, %c0_i32, %c0_i32_0 : i32, i32, i32
  }
  func.func @transform_2(%arg0: i32, %arg1: i32, %arg2: i32) -> (i32, i32, i32, i32) {
    %c0_i32 = arith.constant 0 : i32
    %c0_i32_0 = arith.constant 0 : i32
    %c0_i32_1 = arith.constant 0 : i32
    return %c0_i32, %c0_i32_0, %arg1, %arg2 : i32, i32, i32, i32
  }
  func.func @transform_3(%arg0: i32, %arg1: i32, %arg2: i32) -> (i32, i32) {
    %c0_i32 = arith.constant 0 : i32
    %c0_i32_0 = arith.constant 0 : i32
    %c0_i32_1 = arith.constant 0 : i32
    return %c0_i32, %c0_i32_0 : i32, i32
  }
  func.func @transform_4(%arg0: i32, %arg1: i32, %arg2: i32) -> (i32, i32) {
    %c0_i32 = arith.constant 0 : i32
    %c0_i32_0 = arith.constant 0 : i32
    %c0_i32_1 = arith.constant 0 : i32
    return %c0_i32, %c0_i32_0 : i32, i32
  }
  func.func @transform_5(%arg0: i32, %arg1: i32, %arg2: i32) -> (i32, i32) {
    %c0_i32 = arith.constant 0 : i32
    %c0_i32_0 = arith.constant 0 : i32
    %c0_i32_1 = arith.constant 0 : i32
    return %c0_i32, %c0_i32_0 : i32, i32
  }
  func.func @transform_6(%arg0: i32, %arg1: i32, %arg2: i32) -> (i32, i32) {
    %c0_i32 = arith.constant 0 : i32
    %c0_i32_0 = arith.constant 0 : i32
    %c0_i32_1 = arith.constant 0 : i32
    return %c0_i32, %c0_i32_0 : i32, i32
  }
  func.func @transform_7(%arg0: i32, %arg1: i32, %arg2: i32) -> (i32, i32, i32) {
    %c0_i32 = arith.constant 0 : i32
    %c0_i32_0 = arith.constant 0 : i32
    %c0_i32_1 = arith.constant 0 : i32
    %c0_i32_2 = arith.constant 0 : i32
    return %c0_i32, %c0_i32_0, %c0_i32_1 : i32, i32, i32
  }
  func.func @transform_8(%arg0: i32, %arg1: i32, %arg2: i32) -> (i32, i32) {
    %c0_i32 = arith.constant 0 : i32
    %c0_i32_0 = arith.constant 0 : i32
    %c0_i32_1 = arith.constant 0 : i32
    return %c0_i32, %c0_i32_0 : i32, i32
  }
  func.func @transform_9(%arg0: i32, %arg1: i32, %arg2: i32) -> (i32, i32, i32) {
    %c0_i32 = arith.constant 0 : i32
    %c0_i32_0 = arith.constant 0 : i32
    return %arg0, %arg1, %c0_i32 : i32, i32, i32
  }
}

</mosaic_0001>

<bundles_post_ra>
// kernel: tpu_custom_call.1
= control target key start
LH: loop header
LB: loop body
LE: loop exit
PB: predicated region body
PF: predicated region fallthrough
CT: control target
= control target key end

     0   :  { %s3857_s0 = inlined_call_operand.hbm [shape: bf16[2,8,32], index: 0, kind: input, shape index: {}]   ;;  %s3858_s1 = inlined_call_operand.hbm [shape: bf16[2,8,32], index: 1, kind: input, shape index: {}]   ;;  %s3859_s2 = inlined_call_operand.vmem [shape: s8[1,1,8,8], index: 2, kind: input, shape index: {}]   ;;  %s3860_s3 = inlined_call_operand.hbm [shape: bf16[32,32], index: 3, kind: input, shape index: {}]   ;;  %s3861_s4 = inlined_call_operand.hbm [shape: f32[1,32], index: 4, kind: input, shape index: {}]   ;;  %s3862_s5 = inlined_call_operand.vmem [shape: bf16[32,32], index: 5, kind: input, shape index: {}]   ;;  %s3863_s6 = inlined_call_operand.vmem [shape: f32[1,32], index: 6, kind: input, shape index: {}]   ;;  %s3864_s7 = inlined_call_operand.hbm [shape: bf16[8,4,32], index: 7, kind: input, shape index: {}]   ;;  %s3865_s8 = inlined_call_operand.vmem [shape: f32[1,32], index: 8, kind: input, shape index: {}]   ;;  %s3866_s9 = inlined_call_operand.hbm [shape: f32[2,8,32], index: 9, kind: output, shape index: {}]  }
   0x1   :  { %3874 = sst [smem:[#allocation25_spill]] %s3860_s3 }
   0x2   :  { %3875 = sst [smem:[#allocation26_spill]] %s3861_s4 }
   0x3   :  { %3876 = sst [smem:[#allocation27_spill]] %s3864_s7 }
   0x4   :  { %3877 = sst [smem:[#allocation28_spill]] %s3865_s8 }
   0x5   :  { %3878 = sst [smem:[#allocation29_spill]] %s3866_s9 }
   0x6   :  { %14 = vsyncpa [#allocation8], 0 }
   0x7   :  { %16 = vsyncpa [#allocation8 + $0x1], 0 }
   0x8   :  { %17 = vsyncpa [#allocation11], 0 }
   0x9   :  { %19 = vsyncpa [#allocation11 + $0x1], 0 }
   0xa   :  { %20 = vsyncpa [#allocation14], 0 }
   0xb   :  { %21 = vsyncpa [#allocation9], 0 }
   0xc   :  { %23 = vsyncpa [#allocation9 + $0x1], 0  ;;  %s3138_s30 = smov 0   ;;  %s3140_s10 = smov 0  }
   0xd   :  { %s3142_s11 = smov 0   ;;  %s3144_s12 = smov 0  }
   0xe   :  { %s3146_s13 = smov 0   ;;  %s3148_s14 = smov 0  }
   0xf LB: > { %3879 = sst [smem:[#allocation22_spill]] %s3045_s30  ;;  %s3169_s15 = sadd.s32 4294967295, %s3065_s14   ;;  %s3065_s14 = sphi %s3148_s14, %s29_s14   ;;  %s3061_s13 = sphi %s3146_s13, %s3912_s13   ;;  %s3057_s12 = sphi %s3144_s12, %s3911_s12   ;;  %s3053_s11 = sphi %s3142_s11, %s3910_s11   ;;  %s3049_s10 = sphi %s3140_s10, %s3909_s10   ;;  %s3045_s30 = sphi %s3138_s30, %s3908_s30  }
  0x10   : > { %3880 = sst [smem:[#allocation23_spill]] %s3057_s12  ;;  %s2386_s16 = sadd.s32 4294967294, %s3065_s14  }
  0x11   : > { %p68_p0 = scmp.ne.s32.totalorder %s3049_s10, %s3045_s30  ;;  %p3868_p1 = scmp.eq.s32.totalorder %s3169_s15, 0 }
  0x12   : > { %p280_p3 = scmp.eq.s32.totalorder %s2386_s16, 1  ;;  %p2387_p5 = scmp.ge.s32.totalorder %s3065_s14, 1 }
  0x13   : > { %p3178_p4 = por %p3868_p1, %p68_p0  ;;  %p287_p7 = scmp.lt.s32.totalorder %s3065_s14, 3 }
  0x14   : > { %p3183_p6 = por %p280_p3, %p68_p0  ;;  %s3067_s20 = smov [#allocation12]  }
  0x15   : > { %s3881_s17 = scalar_select %p3178_p4, 1, 0 }
  0x16   : > { %s3882_s18 = scalar_select %p3183_p6, 1, 0 }
  0x17   : > { %p3188_p8 = pnand %p2387_p5, %p287_p7  ;;  %s309_s21 = sshll.u32 %s3067_s20, 4  ;;  %s3192_s21 = int_to_ptr.vmem [resolvable:$true] %s309_s21 }
  0x18   : > { %3883 = sst [smem:[#allocation24_spill]] %s3882_s18  ;;  %s3068_s23 = smov [#allocation13]  }
  0x19   : > { %s3884_s19 = scalar_select %p3188_p8, 1, 0 }
  0x1a   : > { %p2678_p9 = pneg %p3188_p8  ;;  %s323_s24 = sshll.u32 %s3068_s23, 4  ;;  %s3203_s24 = int_to_ptr.vmem [resolvable:$true] %s323_s24 }
  0x1b   : > { %s3069_s25 = smov [#allocation15]   ;;  %s3886_s3 = sld [smem:[#allocation25_spill]] }
  0x1c   : > { %p3199_p11 = pnand %p2678_p9, %p3868_p1  ;;  %s3205_s26 = sshll.u32 %s3069_s25, 4  ;;  %s340_s26 = int_to_ptr.vmem [resolvable:$true] %s3205_s26 }
  0x1e   : > { %p3215_p13 = pneg %p3199_p11 }
  0x21   : > { %s2827_s29 = scalar_lea.hbm %s3886_s3, 256 }
  0x22   : > { %p2828_p12 = scmp.ne.s32.totalorder %s3886_s3, %s2827_s29  ;;  %p2834_p5 = scmp.lt.u32.totalorder %s2827_s29, %s3886_s3 }
  0x24   : > { %p2830_p0 = pnand %p3215_p13, %p2828_p12 }
  0x26   : > { %p2831_p3 = pneg %p2830_p0 }
  0x28   : > { %p2836_p7 = pnand %p2834_p5, %p2831_p3 }
  0x2a   : > { %2839 = shalt.err (!%p2836_p7)
}
  0x2b   : > { %s2840_s27 = scalar_lea.vmem %s3192_s21, 256  ;;  %p2848_p2 = scmp.lt.s32.totalorder %s3192_s21, %s3192_s21 }
  0x2c   : > { %p2841_p9 = scmp.ne.s32.totalorder %s3192_s21, %s2840_s27  ;;  %p2849_p6 = scmp.lt.s32.totalorder %s2840_s27, %s2840_s27 }
  0x2e   : > { %p2843_p10 = pnand %p2841_p9, %p3215_p13  ;;  %p2850_p12 = por %p2849_p6, %p2848_p2 }
  0x30   : > { %p2844_p1 = pneg %p2843_p10 }
  0x32   : > { %p2851_p0 = pnand %p2850_p12, %p2844_p1 }
  0x34   : > { %2854 = shalt.err (!%p2851_p0)
}
  0x35   : > { %s3070_s28 = smov 64   ;;  %s3071_s29 = smov 4  }
  0x36   : > { %2681 = dma.hbm_to_vmem [thread:$0]  (!%p3199_p11), %s3886_s3, 256, %s3192_s21, [#allocation11], %s3070_s28, %s3070_s28, %s3071_s29  }
  0x37   : > { %s3888_s4 = sld [smem:[#allocation26_spill]] }
  0x3d   : > { %s2855_s30 = scalar_lea.hbm %s3888_s4, 16 }
  0x3e   : > { %p2856_p2 = scmp.ne.s32.totalorder %s3888_s4, %s2855_s30  ;;  %p2862_p10 = scmp.lt.u32.totalorder %s2855_s30, %s3888_s4 }
  0x40   : > { %p2858_p1 = pnand %p2856_p2, %p3215_p13 }
  0x42   : > { %p2859_p6 = pneg %p2858_p1 }
  0x44   : > { %p2864_p3 = pnand %p2862_p10, %p2859_p6 }
  0x46   : > { %2867 = shalt.err (!%p2864_p3)
}
  0x47   : > { %s2868_s21 = scalar_lea.vmem %s3203_s24, 16  ;;  %s2875_s8 = scalar_lea.vmem %s3203_s24, 32 }
  0x48   : > { %p2869_p5 = scmp.ne.s32.totalorder %s3203_s24, %s2868_s21  ;;  %p2876_p12 = scmp.lt.s32.totalorder %s3203_s24, %s3203_s24 }
  0x49   : > { %p2877_p0 = scmp.lt.s32.totalorder %s2875_s8, %s2868_s21 }
  0x4a   : > { %p2871_p7 = pnand %p2869_p5, %p3215_p13 }
  0x4b   : > { %p2878_p2 = por %p2877_p0, %p2876_p12 }
  0x4c   : > { %p2872_p9 = pneg %p2871_p7 }
  0x4e   : > { %p2879_p1 = pnand %p2878_p2, %p2872_p9 }
  0x50   : > { %2882 = shalt.err (!%p2879_p1)
}
  0x51   : > { %2684 = dma.hbm_to_vmem [thread:$0]  (!%p3199_p11), %s3888_s4, 16, %s3203_s24, [#allocation14]  }
  0x52   : > { %s3889_s7 = sld [smem:[#allocation27_spill]] }
  0x58   : > { %s2883_s29 = scalar_lea.hbm %s3889_s7, 256 }
  0x59   : > { %p2884_p6 = scmp.ne.s32.totalorder %s3889_s7, %s2883_s29  ;;  %p2890_p5 = scmp.lt.u32.totalorder %s2883_s29, %s3889_s7 }
  0x5b   : > { %p2886_p10 = pnand %p2884_p6, %p3215_p13 }
  0x5d   : > { %p2887_p3 = pneg %p2886_p10 }
  0x5f   : > { %p2892_p7 = pnand %p2890_p5, %p2887_p3 }
  0x61   : > { %2895 = shalt.err (!%p2892_p7)
}
  0x62   : > { %s2896_s27 = scalar_lea.vmem %s340_s26, 256  ;;  %p2904_p2 = scmp.lt.s32.totalorder %s340_s26, %s340_s26 }
  0x63   : > { %p2897_p9 = scmp.ne.s32.totalorder %s340_s26, %s2896_s27  ;;  %p2905_p1 = scmp.lt.s32.totalorder %s2896_s27, %s2896_s27 }
  0x65   : > { %p2899_p12 = pnand %p2897_p9, %p3215_p13  ;;  %p2906_p4 = por %p2905_p1, %p2904_p2 }
  0x67   : > { %p2900_p0 = pneg %p2899_p12 }
  0x69   : > { %p2907_p8 = pnand %p2906_p4, %p2900_p0 }
  0x6b   : > { %2910 = shalt.err (!%p2907_p8)
}
  0x6c   : > { %s3072_s24 = smov 32   ;;  %s3073_s18 = smov 2  }
  0x6d   : > { %2687 = dma.hbm_to_vmem [thread:$0]  (!%p3199_p11), %s3889_s7, 256, %s340_s26, [#allocation14], %s3072_s24, %s3072_s24, %s3073_s18  }
  0x6e   : > { %s55_s9 = sadd.s32 1, %s3053_s11  ;;  %s48_s30 = sadd.s32 1, %s3061_s13 }
  0x6f   : > { %p62_p4 = scmp.ne.s32.totalorder %s3053_s11, %s3049_s10  ;;  %p50_p8 = scmp.ge.s32.totalorder %s48_s30, 2 }
  0x70   : > { %p63_p13 = scmp.eq.s32.totalorder %s3065_s14, 0  ;;  %p3890_p6 = scmp.eq.s32.totalorder %s3169_s15, 1 }
  0x71   : > { %p2702_p3 = scmp.lt.s32.totalorder %s3065_s14, 2  ;;  %s3914_s30 = smov (%p50_p8, %s48_s30), 0 }
  0x72   : > { %p3286_p10 = por %p3890_p6, %p62_p4  ;;  %p64_p5 = por %p63_p13, %p62_p4 }
  0x73   : > { %s356_s22 = sand.u32 1, %s3053_s11   ;;  %s52_s28 = ssub.s32 %s3061_s13, %s3914_s30 }
  0x74   : > { %s3891_s12 = scalar_select %p3286_p10, 1, 0 }
  0x75   : > { %p53_p11 = scmp.eq.s32.totalorder %s52_s28, 0  ;;  %s3296_s26 = sshll.u32 %s356_s22, 2 }
  0x76   : > { %s2394_s29 = sshll.u32 %s3061_s13, 6  ;;  %s360_s27 = scalar_lea.vmem [#allocation7], %s3296_s26 }
  0x77   : > { %s3300_s16 = scalar_select %p53_p11, %s3053_s11, %s55_s9  }
  0x78   : > { %s3305_s25 = scalar_lea.hbm %s3857_s0, %s2394_s29  ;;  %s367_s24 = sshll.u32 %s360_s27, 4  ;;  %s3308_s24 = int_to_ptr.vmem [resolvable:$true] %s367_s24 }
  0x79   : > { %p3312_p7 = pnand %p2702_p3, %p64_p5  ;;  %s3319_s9 = scalar_lea.hbm %s3858_s1, %s2394_s29 }
  0x7a   : > { %s374_s28 = sand.u32 1, %s3065_s14   ;;  %s357_s20 = scalar_lea.sflag [#allocation8], %s356_s22 }
  0x7b   : > { %s2911_s23 = scalar_lea.hbm %s3305_s25, 64  ;;  %p2913_p12 = pneg %p3312_p7 }
  0x7c   : > { %p2912_p9 = scmp.ne.s32.totalorder %s3305_s25, %s2911_s23  ;;  %s2916_s4 = scalar_lea.hbm %s3857_s0, 128 }
  0x7d   : > { %p2917_p1 = scmp.lt.u32.totalorder %s3305_s25, %s3857_s0  ;;  %p2918_p4 = scmp.lt.u32.totalorder %s2916_s4, %s2911_s23 }
  0x7e   : > { %p2914_p0 = pnand %p2913_p12, %p2912_p9  ;;  %p2920_p13 = scmp.lt.u32.totalorder %s2911_s23, %s3305_s25 }
  0x7f   : > { %p2919_p8 = por %p2918_p4, %p2917_p1 }
  0x80   : > { %p2915_p2 = pneg %p2914_p0 }
  0x81   : > { %p2921_p6 = por %p2920_p13, %p2919_p8 }
  0x83   : > { %p2922_p3 = pnand %p2921_p6, %p2915_p2 }
  0x85   : > { %2925 = shalt.err (!%p2922_p3)
}
  0x86   : > { %s2926_s22 = scalar_lea.vmem %s3308_s24, 64  ;;  %s3074_s3 = smov [#allocation7]  }
  0x87   : > { %p2927_p5 = scmp.ne.s32.totalorder %s3308_s24, %s2926_s22  ;;  %s2931_s29 = sshll.u32 %s3074_s3, 4  ;;  %s2932_s29 = int_to_ptr.vmem [resolvable:$false] %s2931_s29 }
  0x88   : > { %s2933_s7 = scalar_lea.vmem %s2932_s29, 128  ;;  %p2934_p0 = scmp.lt.s32.totalorder %s3308_s24, %s2932_s29 }
  0x89   : > { %p2929_p11 = pnand %p2927_p5, %p2913_p12  ;;  %p2935_p1 = scmp.lt.s32.totalorder %s2933_s7, %s2926_s22 }
  0x8b   : > { %p2930_p9 = pneg %p2929_p11  ;;  %p2936_p4 = por %p2935_p1, %p2934_p0 }
  0x8d   : > { %p2937_p8 = pnand %p2936_p4, %p2930_p9 }
  0x8f   : > { %2940 = shalt.err (!%p2937_p8)
}
  0x90   : > { %2691 = dma.hbm_to_vmem [thread:$0]  (!%p3312_p7), %s3305_s25, 64, %s3308_s24, %s357_s20  }
  0x91   : > { %s378_s4 = scalar_lea.vmem [#allocation10], %s3296_s26  ;;  %s375_s23 = scalar_lea.sflag [#allocation11], %s374_s28 }
  0x92   : > { %s385_s8 = sshll.u32 %s378_s4, 4  ;;  %s2941_s27 = scalar_lea.hbm %s3319_s9, 64  ;;  %s386_s8 = int_to_ptr.vmem [resolvable:$true] %s385_s8 }
  0x93   : > { %p2942_p2 = scmp.ne.s32.totalorder %s3319_s9, %s2941_s27  ;;  %s2946_s3 = scalar_lea.hbm %s3858_s1, 128 }
  0x94   : > { %p2947_p3 = scmp.lt.u32.totalorder %s3319_s9, %s3858_s1  ;;  %p2948_p5 = scmp.lt.u32.totalorder %s2946_s3, %s2941_s27 }
  0x95   : > { %p2944_p13 = pnand %p2942_p2, %p2913_p12  ;;  %p2950_p9 = scmp.lt.u32.totalorder %s2941_s27, %s3319_s9 }
  0x96   : > { %p2949_p11 = por %p2948_p5, %p2947_p3 }
  0x97   : > { %p2945_p6 = pneg %p2944_p13 }
  0x98   : > { %p2951_p0 = por %p2950_p9, %p2949_p11 }
  0x9a   : > { %p2952_p1 = pnand %p2951_p0, %p2945_p6 }
  0x9c   : > { %2955 = shalt.err (!%p2952_p1)
}
  0x9d   : > { %s2956_s26 = scalar_lea.vmem %s386_s8, 64  ;;  %s3075_s25 = smov [#allocation10]  }
  0x9e   : > { %p2957_p4 = scmp.ne.s32.totalorder %s386_s8, %s2956_s26  ;;  %s2961_s24 = sshll.u32 %s3075_s25, 4  ;;  %s2962_s24 = int_to_ptr.vmem [resolvable:$false] %s2961_s24 }
  0x9f   : > { %s2963_s28 = scalar_lea.vmem %s2962_s24, 128  ;;  %p2964_p13 = scmp.lt.s32.totalorder %s386_s8, %s2962_s24 }
  0xa0   : > { %p2959_p8 = pnand %p2957_p4, %p2913_p12  ;;  %p2965_p10 = scmp.lt.s32.totalorder %s2963_s28, %s2956_s26 }
  0xa2   : > { %p2960_p2 = pneg %p2959_p8  ;;  %p2966_p3 = por %p2965_p10, %p2964_p13 }
  0xa4   : > { %p2967_p5 = pnand %p2966_p3, %p2960_p2 }
  0xa6   : > { %2970 = shalt.err (!%p2967_p5)
}
  0xa7   : > { %2694 = dma.hbm_to_vmem [thread:$0]  (!%p3312_p7), %s3319_s9, 64, %s386_s8, %s375_s23  }
  0xa8   : > { %p3893_p6 = scmp.ne.s32.totalorder %s3884_s19, 0 }
  0xa9   : > { %s3372_s20 = sand.u32 (!%p3893_p6), 1, %s3049_s10   ;;  %p3894_p12 = scmp.ne.s32.totalorder (!%p3893_p6), %s3881_s17, 0 }
  0xaa   : > { %394 = sbr.rel (%p3893_p6) target bundleno = 1601 (0x641), region = 56  ;;  %s2398_s4 = sshll.u32 (!%p3893_p6), %s3372_s20, 2 }
  0xab   : > { %s397_s27 = scalar_lea.sflag (!%p3893_p6), [#allocation8], %s3372_s20  ;;  %s400_s21 = scalar_lea.vmem (!%p3893_p6), [#allocation7], %s2398_s4 }
  0xb1   : > { %3024 = dma.done.wait (%p3894_p12), %s397_s27, 64  }
  0xb2   : > { %3026 = vsyncadd (%p3894_p12), %s397_s27, 4294967232  ;;  %s405_s18 = sand.u32 1, %s3169_s15   ;;  %s3381_s19 = scalar_lea.vmem [#allocation10], %s2398_s4 }
  0xb3   : > { %s406_s9 = scalar_lea.sflag [#allocation11], %s405_s18 }
  0xb4   : > { %3028 = dma.done.wait (%p3894_p12), %s406_s9, 64  }
  0xb5   : > { %3030 = vsyncadd (%p3894_p12), %s406_s9, 4294967232  ;;  %p3895_p10 = scmp.eq.s32.totalorder %s3169_s15, 0 }
  0xb7   : > { %3032 = dma.done.wait (%p3895_p10), [#allocation11], 256   ;;  %p3896_p7 = pmov %p3895_p10 }
  0xb9   : > { %3034 = vsyncadd (%p3896_p7), [#allocation11], 4294967040  ;;  %p3897_p11 = pmov %p3896_p7 }
  0xba   : > { %p3898_p9 = pmov %p3896_p7 }
  0xbb   : > { %3036 = dma.done.wait (%p3897_p11), [#allocation14], 272  }
  0xbc   : > { %3038 = vsyncadd (%p3898_p9), [#allocation14], 4294967024  ;;  %v3076_v0 = vmov 0.0   ;;  %vm3077_vm0 = vmmov 0   ;;  %v2775_v1 = vld [vmem:[#allocation12] sm:$0xff]   ;;  %v2776_v2 = vld [vmem:[#allocation12 + $0x8] sm:$0xff]  }
  0xbd   : > { %2500 = vmatprep.subr.bf16.mxu0 %v3076_v0  ;;  %2504 = vmatprep.mubr.msk.bf16.mxu0 %vm3077_vm0, %v3076_v0  ;;  %v482_v3 = vld [vmem:[%s400_s21] sm:$0xf]  ;;  %vm506_vm1 = vcmask 261120   ;;  %vm718_vm2 = vcmask 31744   ;;  %v2777_v4 = vld [vmem:[%s3862_s5] sm:$0xff]   ;;  %v2778_v5 = vld [vmem:[%s3862_s5 + $0x8] sm:$0xff]  }
  0xbe   : > { %2508 = vmatprep.subr.bf16.mxu1 %v3076_v0  ;;  %2512 = vmatprep.mubr.msk.bf16.mxu1 %vm3077_vm0, %v3076_v0  ;;  %719 = vst.msk [vmem:[#allocation6] sm:$0xff] %vm718_vm2, %v3076_v0  ;;  %720 = vst.msk [vmem:[#allocation6 + $0x8] sm:$0xff] %vm718_vm2, %v3076_v0  ;;  %v591_v6 = vld [vmem:[%s3381_s19] sm:$0xf]  ;;  %v2404_v7 = vld [vmem:[#allocation13] ss:$0 sm:$0xff] }
  0xbf   : > { %2501 = vmatpush3.bf16.msra.mxu0 %v2775_v1  ;;  %721 = vst.msk [vmem:[#allocation6 + $0x10] sm:$0xff] %vm718_vm2, %v3076_v0  ;;  %722 = vst.msk [vmem:[#allocation6 + $0x18] sm:$0xff] %vm718_vm2, %v3076_v0  ;;  %2509 = vmatpush3.bf16.msra.mxu1 %v2777_v4  ;;  %vm551_vm3 = vcmask 27648   ;;  %s3078_s22 = smov 116   ;;  %s3079_s3 = smov 124   ;;  %vm1346_vm4 = vcmask 1043456  }
  0xc0   : > { %2502 = vmatprep.subr.bf16.mxu0 %v3076_v0  ;;  %723 = vst.msk [vmem:[#allocation6 + $0x20] sm:$0xff] %vm718_vm2, %v3076_v0  ;;  %724 = vst.msk [vmem:[#allocation6 + $0x28] sm:$0xff] %vm718_vm2, %v3076_v0  ;;  %2510 = vmatprep.subr.bf16.mxu1 %v3076_v0  ;;  %s3080_s29 = smov 112   ;;  %s3081_s7 = smov 120   ;;  %v2409_v37 = vld [vmem:[%s3863_s6] ss:$0 sm:$0xff] }
  0xc1   : > { %725 = vst.msk [vmem:[#allocation6 + $0x30] sm:$0xff] %vm718_vm2, %v3076_v0  ;;  %726 = vst.msk [vmem:[#allocation6 + $0x38] sm:$0xff] %vm718_vm2, %v3076_v0  ;;  %s3082_s26 = smov 104   ;;  %s3083_s25 = smov 108   ;;  %v743_v44 = vld [vmem:[%s3859_s2] sm:$0x3] }
  0xc2   : > { %s3084_s24 = smov 100   ;;  %v744_v45 = vunpack.c.0.s8 %v743_v44  ;;  %vm1101_vm5 = vcmask 64512   ;;  %vm701_vm6 = vcmask 7168   ;;  %v3085_v57 = vmov -inf   ;;  %s3899_s18 = sld [smem:[#allocation23_spill]] }
  0xc3   : > { %2503 = vmatpush3.bf16.msra.mxu0 %v2776_v2  ;;  %2511 = vmatpush3.bf16.msra.mxu1 %v2778_v5  ;;  %702 = vst.msk [vmem:[#allocation4] sm:$0xff] %vm701_vm6, %v3085_v57  ;;  %703 = vst.msk [vmem:[#allocation4 + $0x8] sm:$0xff] %vm701_vm6, %v3085_v57  ;;  %v3086_v58 = vmov 0   ;;  %vm1825_vm7 = vcmask 1041408   ;;  %s2403_s9 = sshll.u32 %s3372_s20, 3  ;;  %s3900_s17 = sld [smem:[#allocation28_spill]] }
  0xc4   : > { %2516 = vmatprep.subr.bf16.mxu0 %v3076_v0  ;;  %2522 = vmatprep.subr.bf16.mxu1 %v3076_v0  ;;  %v745_v46 = vcvt.s32.f32 %v744_v45  ;;  %704 = vst.msk [vmem:[#allocation4 + $0x10] sm:$0xff] %vm701_vm6, %v3085_v57  ;;  %705 = vst.msk [vmem:[#allocation4 + $0x18] sm:$0xff] %vm701_vm6, %v3085_v57  ;;  %s467_s23 = scalar_lea.vmem [#allocation16], %s2403_s9  ;;  %p3902_p1 = scmp.ne.s32.totalorder %s3891_s12, 0 }
  0xc5   : > { %706 = vst.msk [vmem:[#allocation4 + $0x20] sm:$0xff] %vm701_vm6, %v3085_v57  ;;  %707 = vst.msk [vmem:[#allocation4 + $0x28] sm:$0xff] %vm701_vm6, %v3085_v57  ;;  %2773 = vset.pattern.permute.xlu0 %v3086_v58  ;;  %2774 = vset.pattern.permute.xlu1 %v3086_v58  ;;  %s3087_s28 = smov [#allocation16]  }
  0xc6   : > { %2505 = vmatmul.mubr.msk.bf16.vlgmr.msra.gmra.mrb[0].mxu0 %vm506_vm1, %v482_v3  ;;  %2513 = vmatmul.mubr.msk.bf16.vlgmr.msra.gmra.mrb[0].mxu1 %vm506_vm1, %v591_v6  ;;  %v2414_v49 = vadd.f32 -1.0, %v745_v46  ;;  %708 = vst.msk [vmem:[#allocation4 + $0x30] sm:$0xff] %vm701_vm6, %v3085_v57  ;;  %709 = vst.msk [vmem:[#allocation4 + $0x38] sm:$0xff] %vm701_vm6, %v3085_v57  ;;  %s2975_s4 = sshll.u32 %s3087_s28, 4  ;;  %s2976_s4 = int_to_ptr.vmem [resolvable:$false] %s2975_s4 }
  0xc7   : > { %2518 = vmatprep.mubr.msk.bf16.mxu0 %vm3077_vm0, %v3076_v0  ;;  %2524 = vmatprep.mubr.msk.bf16.mxu1 %vm3077_vm0, %v3076_v0  ;;  %710 = vst.msk [vmem:[#allocation5] sm:$0xff] %vm701_vm6, %v3076_v0  ;;  %711 = vst.msk [vmem:[#allocation5 + $0x8] sm:$0xff] %vm701_vm6, %v3076_v0  ;;  %s2977_s27 = scalar_lea.vmem %s2976_s4, 256 }
  0xc8   : > { %v3501_v50 = vmul.f32 1e+09, %v2414_v49  ;;  %712 = vst.msk [vmem:[#allocation5 + $0x10] sm:$0xff] %vm701_vm6, %v3076_v0  ;;  %713 = vst.msk [vmem:[#allocation5 + $0x18] sm:$0xff] %vm701_vm6, %v3076_v0  ;;  %s2441_s8 = sshll.u32 %s3899_s18, 7 }
  0xc9   : > { %714 = vst.msk [vmem:[#allocation5 + $0x20] sm:$0xff] %vm701_vm6, %v3076_v0  ;;  %715 = vst.msk [vmem:[#allocation5 + $0x28] sm:$0xff] %vm701_vm6, %v3076_v0 }
  0xca   : > { %716 = vst.msk [vmem:[#allocation5 + $0x30] sm:$0xff] %vm701_vm6, %v3076_v0  ;;  %717 = vst.msk [vmem:[#allocation5 + $0x38] sm:$0xff] %vm701_vm6, %v3076_v0 }
  0xcb   : > { %v3584_v46 = vld [vmem:[#allocation4 + $0x10] sm:$0xff] }
 0x199   : > { %v544_v8 = vpop.f32.mrb[0].mxu0  ;;  %v652_v38 = vpop.f32.mrb[0].mxu1 }
 0x19a   : > { %v545_v9 = vadd.f32 %v2404_v7, %v544_v8  ;;  %v2506_v10 = vpop.f32.mrb[1].mxu0  ;;  %v653_v39 = vadd.f32 %v2409_v37, %v652_v38  ;;  %v2514_v40 = vpop.f32.mrb[1].mxu1  ;;  %v3567_v38 = vld [vmem:[#allocation4] sm:$0xff] }
 0x19b   : > { %v547_v11 = vpop.f32.mrb[2].mxu0  ;;  %v655_v41 = vpop.f32.mrb[2].mxu1 }
 0x19c   : > { %v550_v12 = vpack.c.bf16 %v545_v9, %v545_v9  ;;  %v2507_v13 = vpop.f32.mrb[3].mxu0  ;;  %v3492_v42 = vpack.c.bf16 %v653_v39, %v653_v39  ;;  %v2515_v43 = vpop.f32.mrb[3].mxu1 }
 0x19d   : > { %v3579_v43 = vld [vmem:[#allocation4 + $0x8] sm:$0xff] }
 0x19e   : > { %552 = vst.msk [vmem:[#allocation2] sm:$0xf] %vm551_vm3, %v550_v12  ;;  %566 = vrot.lane.b32.xlu1 %v550_v12, %s3078_s22  ;;  %556 = vrot.lane.b32.xlu0 %v550_v12, %s3079_s3  ;;  %659 = vst.msk [vmem:[#allocation3] sm:$0xf] %vm551_vm3, %v3492_v42 }
 0x1a2   : > { %571 = vrot.lane.b32.xlu1 %v550_v12, %s3080_s29  ;;  %561 = vrot.lane.b32.xlu0 %v550_v12, %s3081_s7 }
 0x1a5   : > { %v727_v14 = vld [vmem:[#allocation2] sm:$0xf] }
 0x1a6   : > { %581 = vrot.lane.b32.xlu1 %v550_v12, %s3082_s26  ;;  %576 = vrot.lane.b32.xlu0 %v550_v12, %s3083_s25  ;;  %v750_v15 = vsel %vm718_vm2, %v727_v14, 0  ;;  %v735_v47 = vld [vmem:[#allocation3] sm:$0xf] }
 0x1a7   : > { %2517 = vmatpush3.bf16.xpose.msra.mxu0 %v750_v15  ;;  %v1348_v48 = vsel %vm1346_vm4, %v735_v47, 0 }
 0x1a8   : > { %2528 = vmatprep.subr.bf16.mxu0 %v3076_v0 }
 0x1aa   : > { %586 = vrot.lane.b32.xlu0 %v550_v12, %s3084_s24 }
 0x1ae   : > { %2519 = vmatmul.mubr.msk.bf16.vlgmr.msra.gmra.mrb[4].mxu0 %vm718_vm2, %v727_v14 }
 0x1af   : > { %2530 = vmatprep.mubr.msk.bf16.mxu0 %vm3077_vm0, %v3076_v0 }
 0x210   : > { %v567_v16 = vpop.permute.xlu1 %566  ;;  %v557_v17 = vpop.permute.xlu0 %556 }
 0x211   : > { %570 = vst.msk [vmem:[#allocation2 + $0xc] sm:$0xf] %vm551_vm3, %v567_v16  ;;  %560 = vst.msk [vmem:[#allocation2 + $0x4] sm:$0xf] %vm551_vm3, %v557_v17 }
 0x214   : > { %v572_v18 = vpop.permute.xlu1 %571  ;;  %v562_v19 = vpop.permute.xlu0 %561 }
 0x215   : > { %575 = vst.msk [vmem:[#allocation2 + $0x10] sm:$0xf] %vm551_vm3, %v572_v18  ;;  %565 = vst.msk [vmem:[#allocation2 + $0x8] sm:$0xf] %vm551_vm3, %v562_v19 }
 0x218   : > { %v582_v20 = vpop.permute.xlu1 %581  ;;  %v577_v21 = vpop.permute.xlu0 %576  ;;  %v728_v22 = vld [vmem:[#allocation2 + $0x4] sm:$0xf]  ;;  %v730_v27 = vld [vmem:[#allocation2 + $0xc] sm:$0xf] }
 0x219   : > { %585 = vst.msk [vmem:[#allocation2 + $0x18] sm:$0xf] %vm551_vm3, %v582_v20  ;;  %580 = vst.msk [vmem:[#allocation2 + $0x14] sm:$0xf] %vm551_vm3, %v577_v21  ;;  %v793_v23 = vsel %vm718_vm2, %v728_v22, 0  ;;  %v879_v28 = vsel %vm718_vm2, %v730_v27, 0 }
 0x21a   : > { %2523 = vmatpush3.bf16.xpose.msra.mxu1 %v793_v23 }
 0x21b   : > { %2534 = vmatprep.subr.bf16.mxu1 %v3076_v0 }
 0x21c   : > { %v587_v24 = vpop.permute.xlu0 %586  ;;  %v729_v25 = vld [vmem:[#allocation2 + $0x8] sm:$0xf]  ;;  %v731_v29 = vld [vmem:[#allocation2 + $0x10] sm:$0xf] }
 0x21d   : > { %590 = vst.msk [vmem:[#allocation2 + $0x1c] sm:$0xf] %vm551_vm3, %v587_v24  ;;  %v836_v26 = vsel %vm718_vm2, %v729_v25, 0  ;;  %v922_v30 = vsel %vm718_vm2, %v731_v29, 0 }
 0x21e   : > { %2529 = vmatpush3.bf16.xpose.msra.mxu0 %v836_v26 }
 0x21f   : > { %2540 = vmatprep.subr.bf16.mxu0 %v3076_v0 }
 0x220   : > { %v732_v31 = vld [vmem:[#allocation2 + $0x14] sm:$0xf]  ;;  %v733_v33 = vld [vmem:[#allocation2 + $0x18] sm:$0xf] }
 0x221   : > { %2525 = vmatmul.mubr.msk.bf16.vlgmr.msra.gmra.mrb[4].mxu1 %vm718_vm2, %v728_v22  ;;  %v965_v32 = vsel %vm718_vm2, %v732_v31, 0  ;;  %v1008_v34 = vsel %vm718_vm2, %v733_v33, 0 }
 0x222   : > { %2535 = vmatpush3.bf16.xpose.msra.mxu1 %v879_v28  ;;  %2536 = vmatprep.mubr.msk.bf16.mxu1 %vm3077_vm0, %v3076_v0 }
 0x223   : > { %2546 = vmatprep.subr.bf16.mxu1 %v3076_v0 }
 0x224   : > { %v734_v35 = vld [vmem:[#allocation2 + $0x1c] sm:$0xf] }
 0x225   : > { %2531 = vmatmul.mubr.msk.bf16.vlgmr.msra.gmra.mrb[8].mxu0 %vm718_vm2, %v729_v25  ;;  %v1051_v36 = vsel %vm718_vm2, %v734_v35, 0 }
 0x226   : > { %2541 = vmatpush3.bf16.xpose.msra.mxu0 %v922_v30  ;;  %2542 = vmatprep.mubr.msk.bf16.mxu0 %vm3077_vm0, %v3076_v0 }
 0x227   : > { %2552 = vmatprep.subr.bf16.mxu0 %v3076_v0 }
 0x229   : > { %2537 = vmatmul.mubr.msk.bf16.vlgmr.msra.gmra.mrb[8].mxu1 %vm718_vm2, %v730_v27 }
 0x22a   : > { %2547 = vmatpush3.bf16.xpose.msra.mxu1 %v965_v32  ;;  %2548 = vmatprep.mubr.msk.bf16.mxu1 %vm3077_vm0, %v3076_v0 }
 0x22b   : > { %2558 = vmatprep.subr.bf16.mxu1 %v3076_v0 }
 0x22d   : > { %2543 = vmatmul.mubr.msk.bf16.vlgmr.msra.gmra.mrb[12].mxu0 %vm718_vm2, %v731_v29 }
 0x22e   : > { %2553 = vmatpush3.bf16.xpose.msra.mxu0 %v1008_v34  ;;  %2554 = vmatprep.mubr.msk.bf16.mxu0 %vm3077_vm0, %v3076_v0 }
 0x22f   : > { %2564 = vmatprep.subr.bf16.mxu0 %v3076_v0 }
 0x231   : > { %2549 = vmatmul.mubr.msk.bf16.vlgmr.msra.gmra.mrb[12].mxu1 %vm718_vm2, %v732_v31 }
 0x232   : > { %2559 = vmatpush3.bf16.xpose.msra.mxu1 %v1051_v36  ;;  %2560 = vmatprep.mubr.msk.bf16.mxu1 %vm3077_vm0, %v3076_v0 }
 0x233   : > { %2570 = vmatprep.subr.bf16.mxu1 %v3076_v0 }
 0x235   : > { %2555 = vmatmul.mubr.msk.bf16.vlgmr.msra.gmra.mrb[16].mxu0 %vm718_vm2, %v733_v33 }
 0x236   : > { %2566 = vmatprep.mubr.msk.bf16.mxu0 %vm3077_vm0, %v3076_v0  ;;  %2565 = vmatpush3.bf16.msra.mxu0 %v1348_v48 }
 0x237   : > { %2576 = vmatprep.subr.bf16.mxu0 %v3076_v0 }
 0x239   : > { %2561 = vmatmul.mubr.msk.bf16.vlgmr.msra.gmra.mrb[16].mxu1 %vm718_vm2, %v734_v35 }
 0x23a   : > { %2572 = vmatprep.mubr.msk.bf16.mxu1 %vm3077_vm0, %v3076_v0 }
 0x281   : > { %v786_v51 = vpop.f32.mrb[4].mxu0 }
 0x282   : > { %v3504_v52 = vadd.f32 %v786_v51, %v3501_v50  ;;  %v2520_v53 = vpop.f32.mrb[5].mxu0 }
 0x283   : > { %v789_v54 = vpop.f32.mrb[6].mxu0 }
 0x284   : > { %v2521_v55 = vpop.f32.mrb[7].mxu0  ;;  %v1102_v56 = vsel %vm1101_vm5, %v3504_v52, -inf }
 0x285   : > { %1103 = vmax.xlane.f32.xlu1 %v1102_v56  ;;  %v3605_v55 = vld [vmem:[#allocation4 + $0x20] sm:$0xff] }
 0x2f4   : > { %v829_v59 = vpop.f32.mrb[4].mxu1 }
 0x2f5   : > { %v3533_v60 = vadd.f32 %v829_v59, %v3501_v50  ;;  %v2526_v61 = vpop.f32.mrb[5].mxu1  ;;  %v3615_v59 = vld [vmem:[#allocation4 + $0x28] sm:$0xff] }
 0x2f6   : > { %v832_v62 = vpop.f32.mrb[6].mxu1 }
 0x2f7   : > { %v2527_v63 = vpop.f32.mrb[7].mxu1  ;;  %v1105_v1 = vsel %vm1101_vm5, %v3533_v60, -inf }
 0x2f8   : > { %1106 = vmax.xlane.f32.xlu0 %v1105_v1  ;;  %v872_v2 = vpop.f32.mrb[8].mxu0  ;;  %v3625_v1 = vld [vmem:[#allocation4 + $0x30] sm:$0xff] }
 0x2f9   : > { %v3538_v3 = vadd.f32 %v872_v2, %v3501_v50  ;;  %v2532_v4 = vpop.f32.mrb[9].mxu0 }
 0x2fa   : > { %v875_v5 = vpop.f32.mrb[10].mxu0 }
 0x2fb   : > { %v2533_v6 = vpop.f32.mrb[11].mxu0  ;;  %v1108_v7 = vsel %vm1101_vm5, %v3538_v3, -inf }
 0x2fc   : > { %v915_v8 = vpop.f32.mrb[8].mxu1  ;;  %1109 = vmax.xlane.f32.xlu0 %v1108_v7  ;;  %v3635_v6 = vld [vmem:[#allocation4 + $0x38] sm:$0xff] }
 0x2fd   : > { %v3543_v9 = vadd.f32 %v915_v8, %v3501_v50  ;;  %v2538_v10 = vpop.f32.mrb[9].mxu1 }
 0x2fe   : > { %v918_v11 = vpop.f32.mrb[10].mxu1 }
 0x2ff   : > { %v2539_v12 = vpop.f32.mrb[11].mxu1  ;;  %v1111_v13 = vsel %vm1101_vm5, %v3543_v9, -inf }
 0x300   : > { %1112 = vmax.xlane.f32.xlu1 %v1111_v13  ;;  %v958_v14 = vpop.f32.mrb[12].mxu0 }
 0x301   : > { %v3548_v15 = vadd.f32 %v958_v14, %v3501_v50  ;;  %v2544_v16 = vpop.f32.mrb[13].mxu0 }
 0x302   : > { %v961_v17 = vpop.f32.mrb[14].mxu0 }
 0x303   : > { %v2545_v18 = vpop.f32.mrb[15].mxu0  ;;  %v1114_v19 = vsel %vm1101_vm5, %v3548_v15, -inf }
 0x304   : > { %v1001_v20 = vpop.f32.mrb[12].mxu1  ;;  %1115 = vmax.xlane.f32.xlu0 %v1114_v19 }
 0x305   : > { %v3553_v21 = vadd.f32 %v1001_v20, %v3501_v50  ;;  %v2550_v22 = vpop.f32.mrb[13].mxu1 }
 0x306   : > { %v1004_v23 = vpop.f32.mrb[14].mxu1 }
 0x307   : > { %v2551_v24 = vpop.f32.mrb[15].mxu1  ;;  %v1117_v25 = vsel %vm1101_vm5, %v3553_v21, -inf }
 0x308   : > { %1118 = vmax.xlane.f32.xlu1 %v1117_v25  ;;  %v1044_v26 = vpop.f32.mrb[16].mxu0 }
 0x309   : > { %v3558_v27 = vadd.f32 %v1044_v26, %v3501_v50  ;;  %v2556_v28 = vpop.f32.mrb[17].mxu0 }
 0x30a   : > { %v1047_v29 = vpop.f32.mrb[18].mxu0 }
 0x30b   : > { %v2557_v30 = vpop.f32.mrb[19].mxu0  ;;  %v1120_v31 = vsel %vm1101_vm5, %v3558_v27, -inf }
 0x30c   : > { %v1087_v32 = vpop.f32.mrb[16].mxu1  ;;  %1121 = vmax.xlane.f32.xlu0 %v1120_v31 }
 0x30d   : > { %v3563_v33 = vadd.f32 %v1087_v32, %v3501_v50  ;;  %v2562_v34 = vpop.f32.mrb[17].mxu1  ;;  %v3594_v50 = vld [vmem:[#allocation4 + $0x18] sm:$0xff] }
 0x30e   : > { %v1090_v35 = vpop.f32.mrb[18].mxu1 }
 0x30f   : > { %v2563_v36 = vpop.f32.mrb[19].mxu1  ;;  %v1123_v37 = vsel %vm1101_vm5, %v3563_v33, -inf }
 0x310   : > { %1124 = vmax.xlane.f32.xlu1 %v1123_v37 }
 0x312   : > { %v1104_v39 = vpop.xlane.xlu1 %1103 }
 0x313   : > { %v3570_v40 = vmax.f32 %v3567_v38, %v1104_v39 }
 0x315   : > { %v1134_v41 = vsub.f32 %v3567_v38, %v3570_v40  ;;  %1728 = vst.msk [vmem:[#allocation4] sm:$0xff] %vm701_vm6, %v3570_v40 }
 0x321   : > { %663 = vrot.lane.b32.xlu1 %v3492_v42, %s3079_s3 }
 0x322   : > { %1160 = vperm.xlu0 %2773, %v3570_v40  }
 0x385   : > { %v1107_v44 = vpop.xlane.xlu0 %1106 }
 0x386   : > { %v3582_v45 = vmax.f32 %v3579_v43, %v1107_v44 }
 0x388   : > { %v1135_v47 = vsub.f32 %v3579_v43, %v3582_v45  ;;  %1729 = vst.msk [vmem:[#allocation4 + $0x8] sm:$0xff] %vm701_vm6, %v3582_v45  ;;  %1165 = vperm.xlu1 %2774, %v3582_v45  }
 0x389   : > { %v1110_v48 = vpop.xlane.xlu0 %1109 }
 0x38a   : > { %v3592_v49 = vmax.f32 %v3584_v46, %v1110_v48 }
 0x38c   : > { %v1136_v51 = vsub.f32 %v3584_v46, %v3592_v49  ;;  %1730 = vst.msk [vmem:[#allocation4 + $0x10] sm:$0xff] %vm701_vm6, %v3592_v49  ;;  %668 = vrot.lane.b32.xlu1 %v3492_v42, %s3081_s7  ;;  %s3901_s7 = sld [smem:[#allocation29_spill]] }
 0x38d   : > { %v1113_v53 = vpop.xlane.xlu1 %1112 }
 0x38e   : > { %v3603_v54 = vmax.f32 %v3594_v50, %v1113_v53 }
 0x390   : > { %v1137_v56 = vsub.f32 %v3594_v50, %v3603_v54  ;;  %1731 = vst.msk [vmem:[#allocation4 + $0x18] sm:$0xff] %vm701_vm6, %v3603_v54  ;;  %1170 = vperm.xlu1 %2774, %v3592_v49  }
 0x391   : > { %v1116_v57 = vpop.xlane.xlu0 %1115 }
 0x392   : > { %v3613_v58 = vmax.f32 %v3605_v55, %v1116_v57  ;;  %v1148_v46 = vmul.f32 1.442695, %v1137_v56  ;;  %v1222_v56 = vld [vmem:[#allocation5] sm:$0xff] }
 0x394   : > { %v1138_v61 = vsub.f32 %v3605_v55, %v3613_v58  ;;  %1732 = vst.msk [vmem:[#allocation4 + $0x20] sm:$0xff] %vm701_vm6, %v3613_v58  ;;  %1175 = vperm.xlu1 %2774, %v3603_v54  }
 0x395   : > { %v1119_v62 = vpop.xlane.xlu1 %1118 }
 0x396   : > { %v3623_v63 = vmax.f32 %v3615_v59, %v1119_v62 }
 0x398   : > { %v1139_v2 = vsub.f32 %v3615_v59, %v3623_v63  ;;  %1733 = vst.msk [vmem:[#allocation4 + $0x28] sm:$0xff] %vm701_vm6, %v3623_v63  ;;  %1180 = vperm.xlu1 %2774, %v3613_v58   ;;  %v1821_v59 = vld [vmem:[#allocation15 + $0x2] sm:$0x3] }
 0x399   : > { %v1122_v4 = vpop.xlane.xlu0 %1121 }
 0x39a   : > { %v3633_v5 = vmax.f32 %v3625_v1, %v1122_v4 }
 0x39c   : > { %v1140_v7 = vsub.f32 %v3625_v1, %v3633_v5  ;;  %1734 = vst.msk [vmem:[#allocation4 + $0x30] sm:$0xff] %vm701_vm6, %v3633_v5  ;;  %1185 = vperm.xlu1 %2774, %v3623_v63   ;;  %1190 = vperm.xlu0 %2773, %v3633_v5   ;;  %v1827_v63 = vsel %vm1825_vm7, %v1821_v59, 0  ;;  %v1226_v5 = vld [vmem:[#allocation5 + $0x20] sm:$0xff] }
 0x39d   : > { %v1125_v8 = vpop.xlane.xlu1 %1124 }
 0x39e   : > { %v3644_v10 = vmax.f32 %v3635_v6, %v1125_v8 }
 0x3a0   : > { %v1141_v11 = vsub.f32 %v3635_v6, %v3644_v10  ;;  %1735 = vst.msk [vmem:[#allocation4 + $0x38] sm:$0xff] %vm701_vm6, %v3644_v10  ;;  %673 = vrot.lane.b32.xlu1 %v3492_v42, %s3078_s22  ;;  %678 = vrot.lane.b32.xlu0 %v3492_v42, %s3080_s29  ;;  %s2234_s22 = sshll.u32 %s467_s23, 4  ;;  %s3809_s22 = int_to_ptr.vmem [resolvable:$true] %s2234_s22 }
 0x3a1   : > { %v664_v12 = vpop.permute.xlu1 %663  ;;  %v1161_v13 = vpop.permute.xlu0 %1160  ;;  %p2978_p2 = scmp.lt.s32.totalorder %s3809_s22, %s2976_s4 }
 0x3a2   : > { %667 = vst.msk [vmem:[#allocation3 + $0x4] sm:$0xf] %vm551_vm3, %v664_v12  ;;  %v1198_v14 = vsub.f32 %v3504_v52, %v1161_v13  ;;  %v1156_v55 = vmul.f32 1.442695, %v1141_v11 }
 0x3a4   : > { %v1206_v16 = vmul.f32 1.442695, %v1198_v14  ;;  %1195 = vperm.xlu1 %2774, %v3644_v10   ;;  %688 = vrot.lane.b32.xlu0 %v3492_v42, %s3082_s26  ;;  %s3807_s26 = scalar_lea.hbm %s3901_s7, %s2441_s8 }
 0x3a6   : > { %2779 = vpow2.f32 %v1206_v16 }
 0x3a8   : > { %683 = vrot.lane.b32.xlu1 %v3492_v42, %s3083_s25  ;;  %s2220_s25 = scalar_lea.sflag [#allocation9], %s3372_s20 }
 0x3a9   : > { %v736_v17 = vld [vmem:[#allocation3 + $0x4] sm:$0xf] }
 0x3aa   : > { %v1394_v18 = vsel %vm1346_vm4, %v736_v17, 0 }
 0x3ab   : > { %2571 = vmatpush3.bf16.msra.mxu1 %v1394_v18 }
 0x3ac   : > { %693 = vrot.lane.b32.xlu1 %v3492_v42, %s3084_s24  ;;  %2582 = vmatprep.subr.bf16.mxu1 %v3076_v0  ;;  %s2971_s24 = scalar_lea.vmem %s3809_s22, 128 }
 0x3ad   : > { %p2972_p0 = scmp.ne.s32.totalorder %s3809_s22, %s2971_s24  ;;  %p2979_p13 = scmp.lt.s32.totalorder %s2977_s27, %s2971_s24 }
 0x3af   : > { %p2973_p4 = pnand %p2972_p0, %p3902_p1  ;;  %p2980_p3 = por %p2979_p13, %p2978_p2 }
 0x3b0   : > { %v2780_v52 = vpop.eup %2779 }
 0x3b1   : > { %v1335_v19 = vpack.c.bf16 %v2780_v52, %v2780_v52  ;;  %v1238_v20 = vsel %vm1101_vm5, %v2780_v52, 0.0  ;;  %p2974_p8 = pneg %p2973_p4 }
 0x3b3   : > { %2567 = vmatmul.mubr.msk.bf16.vlgmr.msra.gmra.mrb[20].mxu0 %vm1101_vm5, %v1335_v19  ;;  %p2981_p5 = pnand %p2980_p3, %p2974_p8 }
 0x3b4   : > { %2578 = vmatprep.mubr.msk.bf16.mxu0 %vm3077_vm0, %v3076_v0 }
 0x3d0   : > { %1239 = vadd.xlane.f32.xlu1 %v1238_v20 }
 0x407   : > { %v1166_v22 = vpop.permute.xlu1 %1165 }
 0x408   : > { %v1199_v23 = vsub.f32 %v3533_v60, %v1166_v22 }
 0x40a   : > { %v1208_v24 = vmul.f32 1.442695, %v1199_v23 }
 0x40b   : > { %v669_v25 = vpop.permute.xlu1 %668 }
 0x40c   : > { %2781 = vpow2.f32 %v1208_v24  ;;  %672 = vst.msk [vmem:[#allocation3 + $0x8] sm:$0xf] %vm551_vm3, %v669_v25 }
 0x40f   : > { %v1171_v42 = vpop.permute.xlu1 %1170 }
 0x410   : > { %v1200_v26 = vsub.f32 %v3538_v3, %v1171_v42 }
 0x412   : > { %v1210_v28 = vmul.f32 1.442695, %v1200_v26 }
 0x413   : > { %v1176_v29 = vpop.permute.xlu1 %1175  ;;  %v737_v30 = vld [vmem:[#allocation3 + $0x8] sm:$0xf] }
 0x414   : > { %2783 = vpow2.f32 %v1210_v28  ;;  %v1201_v31 = vsub.f32 %v3543_v9, %v1176_v29  ;;  %v1440_v32 = vsel %vm1346_vm4, %v737_v30, 0 }
 0x415   : > { %2577 = vmatpush3.bf16.msra.mxu0 %v1440_v32 }
 0x416   : > { %v2782_v34 = vpop.eup %2781  ;;  %v1212_v35 = vmul.f32 1.442695, %v1201_v31  ;;  %2588 = vmatprep.subr.bf16.mxu0 %v3076_v0 }
 0x417   : > { %v1181_v60 = vpop.permute.xlu1 %1180  ;;  %v1241_v36 = vsel %vm1101_vm5, %v2782_v34, 0.0  ;;  %v1336_v37 = vpack.c.bf16 %v2782_v34, %v2782_v34 }
 0x418   : > { %2785 = vpow2.f32 %v1212_v35  ;;  %v1202_v3 = vsub.f32 %v3548_v15, %v1181_v60  ;;  %1242 = vadd.xlane.f32.xlu0 %v1241_v36  ;;  %v1144_v35 = vmul.f32 1.442695, %v1135_v47 }
 0x419   : > { %2573 = vmatmul.mubr.msk.bf16.vlgmr.msra.gmra.mrb[20].mxu1 %vm1101_vm5, %v1336_v37 }
 0x41a   : > { %v1214_v39 = vmul.f32 1.442695, %v1202_v3  ;;  %2584 = vmatprep.mubr.msk.bf16.mxu1 %vm3077_vm0, %v3076_v0 }
 0x41b   : > { %v1186_v9 = vpop.permute.xlu1 %1185  ;;  %v1191_v44 = vpop.permute.xlu0 %1190 }
 0x41c   : > { %2787 = vpow2.f32 %v1214_v39  ;;  %v1203_v48 = vsub.f32 %v3553_v21, %v1186_v9  ;;  %v1204_v53 = vsub.f32 %v3558_v27, %v1191_v44  ;;  %v1146_v39 = vmul.f32 1.442695, %v1136_v51 }
 0x41d   : > { %v1142_v51 = vmul.f32 1.442695, %v1134_v41  ;;  %v1152_v41 = vmul.f32 1.442695, %v1139_v2  ;;  %v1223_v2 = vld [vmem:[#allocation5 + $0x8] sm:$0xff] }
 0x41e   : > { %v2784_v57 = vpop.eup %2783  ;;  %v1216_v62 = vmul.f32 1.442695, %v1203_v48  ;;  %v1218_v4 = vmul.f32 1.442695, %v1204_v53 }
 0x41f   : > { %v674_v8 = vpop.permute.xlu1 %673  ;;  %v679_v12 = vpop.permute.xlu0 %678  ;;  %v1244_v15 = vsel %vm1101_vm5, %v2784_v57, 0.0  ;;  %v1337_v13 = vpack.c.bf16 %v2784_v57, %v2784_v57 }
 0x420   : > { %2789 = vpow2.f32 %v1216_v62  ;;  %677 = vst.msk [vmem:[#allocation3 + $0xc] sm:$0xf] %vm551_vm3, %v674_v8  ;;  %682 = vst.msk [vmem:[#allocation3 + $0x10] sm:$0xf] %vm551_vm3, %v679_v12  ;;  %1245 = vadd.xlane.f32.xlu0 %v1244_v15 }
 0x421   : > { %2791 = vpow2.f32 %v1218_v4  ;;  %2579 = vmatmul.mubr.msk.bf16.vlgmr.msra.gmra.mrb[24].mxu0 %vm1101_vm5, %v1337_v13  ;;  %v1819_v4 = vld [vmem:[#allocation15] sm:$0x3] }
 0x422   : > { %v2786_v21 = vpop.eup %2785  ;;  %2590 = vmatprep.mubr.msk.bf16.mxu0 %vm3077_vm0, %v3076_v0  ;;  %v1873_v8 = vsel %vm1825_vm7, %v1819_v4, 0 }
 0x423   : > { %v1196_v27 = vpop.permute.xlu1 %1195  ;;  %v689_v14 = vpop.permute.xlu0 %688  ;;  %v1247_v16 = vsel %vm1101_vm5, %v2786_v21, 0.0  ;;  %v1338_v42 = vpack.c.bf16 %v2786_v21, %v2786_v21 }
 0x424   : > { %v1205_v17 = vsub.f32 %v3563_v33, %v1196_v27  ;;  %692 = vst.msk [vmem:[#allocation3 + $0x18] sm:$0xf] %vm551_vm3, %v689_v14  ;;  %1248 = vadd.xlane.f32.xlu0 %v1247_v16  ;;  %v1150_v14 = vmul.f32 1.442695, %v1138_v61 }
 0x426   : > { %v2788_v18 = vpop.eup %2787  ;;  %v1220_v52 = vmul.f32 1.442695, %v1205_v17 }
 0x427   : > { %v684_v19 = vpop.permute.xlu1 %683  ;;  %v1250_v20 = vsel %vm1101_vm5, %v2788_v18, 0.0  ;;  %v738_v22 = vld [vmem:[#allocation3 + $0xc] sm:$0xf]  ;;  %v739_v23 = vld [vmem:[#allocation3 + $0x10] sm:$0xf]  ;;  %v1339_v30 = vpack.c.bf16 %v2788_v18, %v2788_v18 }
 0x428   : > { %2793 = vpow2.f32 %v1220_v52  ;;  %687 = vst.msk [vmem:[#allocation3 + $0x14] sm:$0xf] %vm551_vm3, %v684_v19  ;;  %1251 = vadd.xlane.f32.xlu1 %v1250_v20  ;;  %v1486_v24 = vsel %vm1346_vm4, %v738_v22, 0  ;;  %v1532_v25 = vsel %vm1346_vm4, %v739_v23, 0  ;;  %v1154_v52 = vmul.f32 1.442695, %v1140_v7 }
 0x429   : > { %2583 = vmatpush3.bf16.msra.mxu1 %v1486_v24  ;;  %2589 = vmatpush3.bf16.msra.mxu0 %v1532_v25  ;;  %2795 = vpow2.f32 %v1144_v35  ;;  %v1224_v19 = vld [vmem:[#allocation5 + $0x10] sm:$0xff]  ;;  %v1225_v23 = vld [vmem:[#allocation5 + $0x18] sm:$0xff] }
 0x42a   : > { %v2790_v33 = vpop.eup %2789  ;;  %2600 = vmatprep.subr.bf16.mxu0 %v3076_v0  ;;  %2594 = vmatprep.subr.bf16.mxu1 %v3076_v0  ;;  %2797 = vpow2.f32 %v1146_v39 }
 0x42b   : > { %v2792_v26 = vpop.eup %2791  ;;  %v694_v28 = vpop.permute.xlu1 %693  ;;  %v1253_v29 = vsel %vm1101_vm5, %v2790_v33, 0.0  ;;  %v741_v31 = vld [vmem:[#allocation3 + $0x18] sm:$0xf]  ;;  %v1340_v3 = vpack.c.bf16 %v2790_v33, %v2790_v33  ;;  %2799 = vpow2.f32 %v1148_v46 }
 0x42c   : > { %697 = vst.msk [vmem:[#allocation3 + $0x1c] sm:$0xf] %vm551_vm3, %v694_v28  ;;  %2585 = vmatmul.mubr.msk.bf16.vlgmr.msra.gmra.mrb[24].mxu1 %vm1101_vm5, %v1338_v42  ;;  %1254 = vadd.xlane.f32.xlu0 %v1253_v29  ;;  %v1256_v32 = vsel %vm1101_vm5, %v2792_v26, 0.0  ;;  %v1624_v34 = vsel %vm1346_vm4, %v741_v31, 0  ;;  %v1341_v45 = vpack.c.bf16 %v2792_v26, %v2792_v26  ;;  %2801 = vpow2.f32 %v1142_v51  ;;  %v1227_v26 = vld [vmem:[#allocation5 + $0x28] sm:$0xff] }
 0x42d   : > { %1257 = vadd.xlane.f32.xlu1 %v1256_v32  ;;  %2591 = vmatmul.mubr.msk.bf16.vlgmr.msra.gmra.mrb[28].mxu0 %vm1101_vm5, %v1339_v30  ;;  %v1228_v30 = vld [vmem:[#allocation5 + $0x30] sm:$0xff] }
 0x42e   : > { %2601 = vmatpush3.bf16.msra.mxu0 %v1624_v34  ;;  %2596 = vmatprep.mubr.msk.bf16.mxu1 %vm3077_vm0, %v3076_v0 }
 0x42f   : > { %v740_v60 = vld [vmem:[#allocation3 + $0x14] sm:$0xf]  ;;  %2602 = vmatprep.mubr.msk.bf16.mxu0 %vm3077_vm0, %v3076_v0  ;;  %2612 = vmatprep.subr.bf16.mxu0 %v3076_v0 }
 0x430   : > { %v1578_v36 = vsel %vm1346_vm4, %v740_v60, 0 }
 0x431   : > { %2595 = vmatpush3.bf16.msra.mxu1 %v1578_v36 }
 0x432   : > { %v2794_v37 = vpop.eup %2793  ;;  %2606 = vmatprep.subr.bf16.mxu1 %v3076_v0 }
 0x433   : > { %v1259_v43 = vsel %vm1101_vm5, %v2794_v37, 0.0  ;;  %v742_v47 = vld [vmem:[#allocation3 + $0x1c] sm:$0xf]  ;;  %v1342_v49 = vpack.c.bf16 %v2794_v37, %v2794_v37  ;;  %v2796_v44 = vpop.eup %2795 }
 0x434   : > { %2597 = vmatmul.mubr.msk.bf16.vlgmr.msra.gmra.mrb[28].mxu1 %vm1101_vm5, %v1340_v3  ;;  %1260 = vadd.xlane.f32.xlu0 %v1259_v43  ;;  %v1670_v9 = vsel %vm1346_vm4, %v742_v47, 0  ;;  %v2798_v48 = vpop.eup %2797  ;;  %v1231_v16 = vmul.f32 %v2796_v44, %v1223_v2  ;;  %v1229_v3 = vld [vmem:[#allocation5 + $0x38] sm:$0xff] }
 0x435   : > { %2603 = vmatmul.mubr.msk.bf16.vlgmr.msra.gmra.mrb[32].mxu0 %vm1101_vm5, %v1341_v45  ;;  %2607 = vmatpush3.bf16.msra.mxu1 %v1670_v9  ;;  %v2800_v50 = vpop.eup %2799  ;;  %v1232_v20 = vmul.f32 %v2798_v48, %v1224_v19 }
 0x436   : > { %2608 = vmatprep.mubr.msk.bf16.mxu1 %vm3077_vm0, %v3076_v0  ;;  %2618 = vmatprep.subr.bf16.mxu1 %v3076_v0  ;;  %v2802_v54 = vpop.eup %2801  ;;  %v1233_v61 = vmul.f32 %v2800_v50, %v1225_v23 }
 0x437   : > { %2614 = vmatprep.mubr.msk.bf16.mxu0 %vm3077_vm0, %v3076_v0  ;;  %v1230_v53 = vmul.f32 %v2802_v54, %v1222_v56  ;;  %2613 = vmatpush3.bf16.msra.mxu0 %v1827_v63  ;;  %v1281_v63 = vld [vmem:[#allocation6 + $0x10] sm:$0xff] }
 0x438   : > { %2624 = vmatprep.subr.bf16.mxu0 %v3076_v0 }
 0x43c   : > { %2609 = vmatmul.mubr.msk.bf16.vlgmr.msra.gmra.mrb[32].mxu1 %vm1101_vm5, %v1342_v49 }
 0x43d   : > { %2620 = vmatprep.mubr.msk.bf16.mxu1 %vm3077_vm0, %v3076_v0  ;;  %2619 = vmatpush3.bf16.msra.mxu1 %v1873_v8 }
 0x43e   : > { %1294 = vperm.xlu1 %2774, %v2796_v44   ;;  %2630 = vmatprep.subr.bf16.mxu1 %v3076_v0  ;;  %v1279_v44 = vld [vmem:[#allocation6] sm:$0xff] }
 0x442   : > { %1299 = vperm.xlu1 %2774, %v2798_v48  }
 0x446   : > { %1304 = vperm.xlu1 %2774, %v2800_v50  }
 0x44a   : > { %1289 = vperm.xlu0 %2773, %v2802_v54  }
 0x45d   : > { %v1240_v57 = vpop.xlane.xlu1 %1239 }
 0x45e   : > { %v1262_v38 = vadd.f32 %v1240_v57, %v1230_v53 }
 0x460   : > { %1271 = vst.msk [vmem:[#allocation5] sm:$0xff] %vm701_vm6, %v1262_v38 }
 0x467   : > { %v1739_v40 = vld [vmem:[#allocation5] sm:$0xff] }
 0x468   : > { %2803 = vrcp.f32 %v1739_v40 }
 0x469   : > { %2805 = vpow2.f32 %v1152_v41 }
 0x46a   : > { %2807 = vpow2.f32 %v1150_v14 }
 0x46b   : > { %2809 = vpow2.f32 %v1154_v52 }
 0x472   : > { %v2804_v62 = vpop.eup %2803 }
 0x473   : > { %1765 = vperm.xlu1 %2774, %v2804_v62   ;;  %v2806_v12 = vpop.eup %2805  ;;  %v1280_v62 = vld [vmem:[#allocation6 + $0x8] sm:$0xff] }
 0x474   : > { %v2808_v25 = vpop.eup %2807  ;;  %v1235_v10 = vmul.f32 %v2806_v12, %v1227_v26 }
 0x475   : > { %v1234_v33 = vmul.f32 %v2808_v25, %v1226_v5  ;;  %v2810_v28 = vpop.eup %2809 }
 0x476   : > { %v1236_v11 = vmul.f32 %v2810_v28, %v1228_v30 }
 0x477   : > { %1314 = vperm.xlu1 %2774, %v2806_v12  }
 0x486   : > { %v3740_v15 = vpop.f32.mrb[20].mxu0 }
 0x487   : > { %v2568_v13 = vpop.f32.mrb[21].mxu0 }
 0x488   : > { %v1387_v21 = vpop.f32.mrb[22].mxu0 }
 0x489   : > { %v2569_v27 = vpop.f32.mrb[23].mxu0 }
 0x4a5   : > { %v1243_v17 = vpop.xlane.xlu0 %1242 }
 0x4a6   : > { %v1263_v18 = vadd.f32 %v1243_v17, %v1231_v16  ;;  %v1965_v16 = vld [vmem:[#allocation15 + $0x6] sm:$0x3] }
 0x4a7   : > { %v1970_v23 = vsel %vm1825_vm7, %v1965_v16, 0 }
 0x4a8   : > { %1272 = vst.msk [vmem:[#allocation5 + $0x8] sm:$0xff] %vm701_vm6, %v1263_v18 }
 0x4ad   : > { %v1246_v22 = vpop.xlane.xlu0 %1245 }
 0x4ae   : > { %v1264_v24 = vadd.f32 %v1246_v22, %v1232_v20 }
 0x4af   : > { %v1740_v58 = vld [vmem:[#allocation5 + $0x8] sm:$0xff] }
 0x4b0   : > { %1273 = vst.msk [vmem:[#allocation5 + $0x10] sm:$0xff] %vm701_vm6, %v1264_v24  ;;  %2811 = vrcp.f32 %v1740_v58  ;;  %v1282_v58 = vld [vmem:[#allocation6 + $0x18] sm:$0xff] }
 0x4b1   : > { %v1249_v1 = vpop.xlane.xlu0 %1248  ;;  %2813 = vpow2.f32 %v1156_v55 }
 0x4b2   : > { %v1265_v7 = vadd.f32 %v1249_v1, %v1233_v61 }
 0x4b4   : > { %1274 = vst.msk [vmem:[#allocation5 + $0x18] sm:$0xff] %vm701_vm6, %v1265_v7 }
 0x4b5   : > { %v1252_v42 = vpop.xlane.xlu1 %1251 }
 0x4b6   : > { %v1266_v29 = vadd.f32 %v1252_v42, %v1234_v33 }
 0x4b7   : > { %v1741_v6 = vld [vmem:[#allocation5 + $0x10] sm:$0xff] }
 0x4b8   : > { %1275 = vst.msk [vmem:[#allocation5 + $0x20] sm:$0xff] %vm701_vm6, %v1266_v29  ;;  %2815 = vrcp.f32 %v1741_v6  ;;  %v1284_v29 = vld [vmem:[#allocation6 + $0x28] sm:$0xff] }
 0x4b9   : > { %v1255_v31 = vpop.xlane.xlu0 %1254 }
 0x4ba   : > { %v2812_v32 = vpop.eup %2811  ;;  %v1258_v34 = vpop.xlane.xlu1 %1257  ;;  %v1267_v35 = vadd.f32 %v1255_v31, %v1235_v10 }
 0x4bb   : > { %v1268_v60 = vadd.f32 %v1258_v34, %v1236_v11  ;;  %1770 = vperm.xlu0 %2773, %v2812_v32   ;;  %v1742_v36 = vld [vmem:[#allocation5 + $0x18] sm:$0xff]  ;;  %v2814_v37 = vpop.eup %2813 }
 0x4bc   : > { %1276 = vst.msk [vmem:[#allocation5 + $0x28] sm:$0xff] %vm701_vm6, %v1267_v35  ;;  %2817 = vrcp.f32 %v1742_v36  ;;  %v1237_v43 = vmul.f32 %v2814_v37, %v1229_v3 }
 0x4bd   : > { %1277 = vst.msk [vmem:[#allocation5 + $0x30] sm:$0xff] %vm701_vm6, %v1268_v60 }
 0x4be   : > { %v1295_v41 = vpop.permute.xlu1 %1294 }
 0x4bf   : > { %1309 = vperm.xlu0 %2773, %v2808_v25   ;;  %v1743_v39 = vld [vmem:[#allocation5 + $0x20] sm:$0xff]  ;;  %v1328_v8 = vmul.f32 %v1295_v41, %v1280_v62  ;;  %v1285_v62 = vld [vmem:[#allocation6 + $0x30] sm:$0xff] }
 0x4c0   : > { %2819 = vrcp.f32 %v1743_v39 }
 0x4c1   : > { %v1261_v45 = vpop.xlane.xlu0 %1260 }
 0x4c2   : > { %v2816_v47 = vpop.eup %2815  ;;  %v1269_v9 = vadd.f32 %v1261_v45, %v1237_v43  ;;  %v1300_v4 = vpop.permute.xlu1 %1299 }
 0x4c3   : > { %1775 = vperm.xlu0 %2773, %v2816_v47   ;;  %v1744_v46 = vld [vmem:[#allocation5 + $0x28] sm:$0xff]  ;;  %v1329_v17 = vmul.f32 %v1300_v4, %v1281_v63  ;;  %v1286_v63 = vld [vmem:[#allocation6 + $0x38] sm:$0xff] }
 0x4c4   : > { %1278 = vst.msk [vmem:[#allocation5 + $0x38] sm:$0xff] %vm701_vm6, %v1269_v9  ;;  %v1745_v49 = vld [vmem:[#allocation5 + $0x30] sm:$0xff]  ;;  %2821 = vrcp.f32 %v1744_v46 }
 0x4c5   : > { %2823 = vrcp.f32 %v1745_v49  ;;  %v1916_v49 = vld [vmem:[#allocation15 + $0x4] sm:$0x3] }
 0x4c6   : > { %v2818_v51 = vpop.eup %2817  ;;  %v1305_v27 = vpop.permute.xlu1 %1304 }
 0x4c7   : > { %1319 = vperm.xlu0 %2773, %v2810_v28   ;;  %1780 = vperm.xlu1 %2774, %v2818_v51   ;;  %v1330_v61 = vmul.f32 %v1305_v27, %v1282_v58  ;;  %v2063_v27 = vld [vmem:[#allocation15 + $0xa] sm:$0x3] }
 0x4c8   : > { %v2068_v16 = vsel %vm1825_vm7, %v2063_v27, 0 }
 0x4c9   : > { %v1290_v48 = vpop.permute.xlu0 %1289 }
 0x4ca   : > { %v2820_v50 = vpop.eup %2819  ;;  %v1327_v54 = vmul.f32 %v1290_v48, %v1279_v44  ;;  %v1283_v44 = vld [vmem:[#allocation6 + $0x20] sm:$0xff] }
 0x4cb   : > { %1785 = vperm.xlu0 %2773, %v2820_v50   ;;  %1324 = vperm.xlu1 %2774, %v2814_v37   ;;  %v1746_v56 = vld [vmem:[#allocation5 + $0x38] sm:$0xff]  ;;  %v1921_v50 = vsel %vm1825_vm7, %v1916_v49, 0 }
 0x4cc   : > { %v1712_v53 = vadd.f32 %v3740_v15, %v1327_v54  ;;  %2825 = vrcp.f32 %v1746_v56 }
 0x4ce   : > { %v2822_v57 = vpop.eup %2821  ;;  %1720 = vst.msk [vmem:[#allocation6] sm:$0xff] %vm718_vm2, %v1712_v53 }
 0x4cf   : > { %v2824_v38 = vpop.eup %2823  ;;  %1790 = vperm.xlu1 %2774, %v2822_v57  }
 0x4d0   : > { %1795 = vperm.xlu0 %2773, %v2824_v38  }
 0x4d5   : > { %v1755_v14 = vld [vmem:[#allocation6] sm:$0xff] }
 0x4d6   : > { %v2826_v40 = vpop.eup %2825 }
 0x4d7   : > { %1800 = vperm.xlu1 %2774, %v2826_v40   ;;  %v2014_v40 = vld [vmem:[#allocation15 + $0x8] sm:$0x3] }
 0x4ec   : > { %v1430_v12 = vpop.f32.mrb[20].mxu1 }
 0x4ed   : > { %v1713_v13 = vadd.f32 %v1430_v12, %v1328_v8  ;;  %v2574_v21 = vpop.f32.mrb[21].mxu1  ;;  %v2019_v8 = vsel %vm1825_vm7, %v2014_v40, 0 }
 0x4ee   : > { %v1433_v59 = vpop.f32.mrb[22].mxu1 }
 0x4ef   : > { %1721 = vst.msk [vmem:[#allocation6 + $0x8] sm:$0xff] %vm718_vm2, %v1713_v13  ;;  %v2575_v15 = vpop.f32.mrb[23].mxu1 }
 0x4f2   : > { %v1766_v2 = vpop.permute.xlu1 %1765 }
 0x4f3   : > { %v1803_v18 = vmul.f32 %v1766_v2, %v1755_v14 }
 0x4f4   : > { %v1476_v52 = vpop.f32.mrb[24].mxu0 }
 0x4f5   : > { %v1811_v19 = vpack.c.bf16 %v1803_v18, %v1803_v18  ;;  %v1714_v20 = vadd.f32 %v1476_v52, %v1329_v17  ;;  %v2580_v22 = vpop.f32.mrb[25].mxu0 }
 0x4f6   : > { %v1479_v24 = vpop.f32.mrb[26].mxu0  ;;  %v1315_v30 = vpop.permute.xlu1 %1314  ;;  %v1756_v9 = vld [vmem:[#allocation6 + $0x8] sm:$0xff] }
 0x4f7   : > { %1722 = vst.msk [vmem:[#allocation6 + $0x10] sm:$0xff] %vm718_vm2, %v1714_v20  ;;  %v2581_v55 = vpop.f32.mrb[27].mxu0  ;;  %2621 = vmatmul.mubr.msk.bf16.vlgmr.msra.gmra.mrb[36].mxu1 %vm718_vm2, %v1811_v19  ;;  %v1332_v10 = vmul.f32 %v1315_v30, %v1284_v29  ;;  %v2112_v19 = vld [vmem:[#allocation15 + $0xc] sm:$0x3] }
 0x4f8   : > { %2631 = vmatpush3.bf16.msra.mxu1 %v1970_v23  ;;  %2632 = vmatprep.mubr.msk.bf16.mxu1 %vm3077_vm0, %v3076_v0  ;;  %v2117_v55 = vsel %vm1825_vm7, %v2112_v19, 0 }
 0x4f9   : > { %2642 = vmatprep.subr.bf16.mxu1 %v3076_v0 }
 0x4fe   : > { %v1757_v38 = vld [vmem:[#allocation6 + $0x10] sm:$0xff] }
 0x4ff   : > { %v1522_v25 = vpop.f32.mrb[24].mxu1 }
 0x500   : > { %v1715_v1 = vadd.f32 %v1522_v25, %v1330_v61  ;;  %v1568_v5 = vpop.f32.mrb[28].mxu0  ;;  %v2586_v7 = vpop.f32.mrb[25].mxu1  ;;  %v2161_v25 = vld [vmem:[#allocation15 + $0xe] sm:$0x3] }
 0x501   : > { %v2592_v33 = vpop.f32.mrb[29].mxu0  ;;  %v1525_v42 = vpop.f32.mrb[26].mxu1  ;;  %v2166_v7 = vsel %vm1825_vm7, %v2161_v25, 0 }
 0x502   : > { %1723 = vst.msk [vmem:[#allocation6 + $0x18] sm:$0xff] %vm718_vm2, %v1715_v1  ;;  %v1571_v26 = vpop.f32.mrb[30].mxu0  ;;  %v2587_v28 = vpop.f32.mrb[27].mxu1 }
 0x503   : > { %v2593_v6 = vpop.f32.mrb[31].mxu0 }
 0x507   : > { %v1614_v11 = vpop.f32.mrb[28].mxu1 }
 0x508   : > { %v1717_v31 = vadd.f32 %v1614_v11, %v1332_v10  ;;  %v1660_v32 = vpop.f32.mrb[32].mxu0  ;;  %v2598_v34 = vpop.f32.mrb[29].mxu1 }
 0x509   : > { %v2604_v35 = vpop.f32.mrb[33].mxu0  ;;  %v1617_v60 = vpop.f32.mrb[30].mxu1  ;;  %v1758_v12 = vld [vmem:[#allocation6 + $0x18] sm:$0xff] }
 0x50a   : > { %1725 = vst.msk [vmem:[#allocation6 + $0x28] sm:$0xff] %vm718_vm2, %v1717_v31  ;;  %v1663_v36 = vpop.f32.mrb[34].mxu0  ;;  %v2599_v37 = vpop.f32.mrb[31].mxu1 }
 0x50b   : > { %v2605_v3 = vpop.f32.mrb[35].mxu0 }
 0x50f   : > { %v1706_v39 = vpop.f32.mrb[32].mxu1 }
 0x510   : > { %v2610_v43 = vpop.f32.mrb[33].mxu1 }
 0x511   : > { %v1709_v45 = vpop.f32.mrb[34].mxu1  ;;  %v1760_v58 = vld [vmem:[#allocation6 + $0x28] sm:$0xff] }
 0x512   : > { %v2611_v47 = vpop.f32.mrb[35].mxu1 }
 0x53a   : > { %v1771_v46 = vpop.permute.xlu0 %1770 }
 0x53b   : > { %v1804_v51 = vmul.f32 %v1771_v46, %v1756_v9 }
 0x53d   : > { %v1812_v48 = vpack.c.bf16 %v1804_v51, %v1804_v51 }
 0x53e   : > { %v1310_v54 = vpop.permute.xlu0 %1309 }
 0x53f   : > { %v1331_v56 = vmul.f32 %v1310_v54, %v1283_v44  ;;  %2615 = vmatmul.mubr.msk.bf16.vlgmr.msra.gmra.mrb[36].mxu0 %vm718_vm2, %v1812_v48 }
 0x540   : > { %2625 = vmatpush3.bf16.msra.mxu0 %v1921_v50  ;;  %2626 = vmatprep.mubr.msk.bf16.mxu0 %vm3077_vm0, %v3076_v0 }
 0x541   : > { %v1716_v53 = vadd.f32 %v1568_v5, %v1331_v56  ;;  %2636 = vmatprep.subr.bf16.mxu0 %v3076_v0 }
 0x542   : > { %v1776_v57 = vpop.permute.xlu0 %1775 }
 0x543   : > { %1724 = vst.msk [vmem:[#allocation6 + $0x20] sm:$0xff] %vm718_vm2, %v1716_v53  ;;  %v1805_v41 = vmul.f32 %v1776_v57, %v1757_v38 }
 0x545   : > { %v1813_v4 = vpack.c.bf16 %v1805_v41, %v1805_v41 }
 0x546   : > { %v1781_v13 = vpop.permute.xlu1 %1780  ;;  %v1320_v21 = vpop.permute.xlu0 %1319 }
 0x547   : > { %v1806_v59 = vmul.f32 %v1781_v13, %v1758_v12  ;;  %v1333_v15 = vmul.f32 %v1320_v21, %v1285_v62  ;;  %2627 = vmatmul.mubr.msk.bf16.vlgmr.msra.gmra.mrb[40].mxu0 %vm718_vm2, %v1813_v4 }
 0x548   : > { %2637 = vmatpush3.bf16.msra.mxu0 %v2019_v8  ;;  %2638 = vmatprep.mubr.msk.bf16.mxu0 %vm3077_vm0, %v3076_v0 }
 0x549   : > { %v1814_v2 = vpack.c.bf16 %v1806_v59, %v1806_v59  ;;  %v1718_v14 = vadd.f32 %v1660_v32, %v1333_v15  ;;  %2648 = vmatprep.subr.bf16.mxu0 %v3076_v0  ;;  %v2439_v59 = vld [vmem:[%s3900_s17] ss:$0 sm:$0xff] }
 0x54a   : > { %v1325_v17 = vpop.permute.xlu1 %1324  ;;  %v1786_v18 = vpop.permute.xlu0 %1785  ;;  %v1759_v52 = vld [vmem:[#allocation6 + $0x20] sm:$0xff] }
 0x54b   : > { %1726 = vst.msk [vmem:[#allocation6 + $0x30] sm:$0xff] %vm718_vm2, %v1718_v14  ;;  %v1334_v20 = vmul.f32 %v1325_v17, %v1286_v63  ;;  %v1807_v22 = vmul.f32 %v1786_v18, %v1759_v52  ;;  %2633 = vmatmul.mubr.msk.bf16.vlgmr.msra.gmra.mrb[40].mxu1 %vm718_vm2, %v1814_v2 }
 0x54c   : > { %2643 = vmatpush3.bf16.msra.mxu1 %v2068_v16  ;;  %2644 = vmatprep.mubr.msk.bf16.mxu1 %vm3077_vm0, %v3076_v0 }
 0x54d   : > { %v1719_v23 = vadd.f32 %v1706_v39, %v1334_v20  ;;  %v1815_v24 = vpack.c.bf16 %v1807_v22, %v1807_v22  ;;  %2654 = vmatprep.subr.bf16.mxu1 %v3076_v0 }
 0x54e   : > { %v1791_v61 = vpop.permute.xlu1 %1790 }
 0x54f   : > { %1727 = vst.msk [vmem:[#allocation6 + $0x38] sm:$0xff] %vm718_vm2, %v1719_v23  ;;  %v1808_v1 = vmul.f32 %v1791_v61, %v1760_v58  ;;  %2639 = vmatmul.mubr.msk.bf16.vlgmr.msra.gmra.mrb[44].mxu0 %vm718_vm2, %v1815_v24  ;;  %v1796_v33 = vpop.permute.xlu0 %1795 }
 0x550   : > { %2649 = vmatpush3.bf16.msra.mxu0 %v2117_v55  ;;  %2650 = vmatprep.mubr.msk.bf16.mxu0 %vm3077_vm0, %v3076_v0 }
 0x551   : > { %v1816_v5 = vpack.c.bf16 %v1808_v1, %v1808_v1 }
 0x552   : > { %v1761_v42 = vld [vmem:[#allocation6 + $0x30] sm:$0xff] }
 0x553   : > { %v1809_v26 = vmul.f32 %v1796_v33, %v1761_v42  ;;  %2645 = vmatmul.mubr.msk.bf16.vlgmr.msra.gmra.mrb[44].mxu1 %vm718_vm2, %v1816_v5 }
 0x554   : > { %2655 = vmatpush3.bf16.msra.mxu1 %v2166_v7  ;;  %2656 = vmatprep.mubr.msk.bf16.mxu1 %vm3077_vm0, %v3076_v0 }
 0x555   : > { %v1817_v28 = vpack.c.bf16 %v1809_v26, %v1809_v26 }
 0x556   : > { %v1762_v29 = vld [vmem:[#allocation6 + $0x38] sm:$0xff]  ;;  %v1801_v30 = vpop.permute.xlu1 %1800 }
 0x557   : > { %v1810_v6 = vmul.f32 %v1801_v30, %v1762_v29  ;;  %2651 = vmatmul.mubr.msk.bf16.vlgmr.msra.gmra.mrb[48].mxu0 %vm718_vm2, %v1817_v28 }
 0x559   : > { %v1818_v10 = vpack.c.bf16 %v1810_v6, %v1810_v6 }
 0x55b   : > { %2657 = vmatmul.mubr.msk.bf16.vlgmr.msra.gmra.mrb[48].mxu1 %vm718_vm2, %v1818_v10 }
 0x5ca   : > { %v1909_v11 = vpop.f32.mrb[36].mxu1 }
 0x5cb   : > { %v2622_v31 = vpop.f32.mrb[37].mxu1 }
 0x5cc   : > { %v1912_v32 = vpop.f32.mrb[38].mxu1 }
 0x5cd   : > { %v2623_v34 = vpop.f32.mrb[39].mxu1 }
 0x612   : > { %v1863_v35 = vpop.f32.mrb[36].mxu0 }
 0x613   : > { %v1910_v60 = vadd.f32 %v1909_v11, %v1863_v35  ;;  %v2616_v36 = vpop.f32.mrb[37].mxu0 }
 0x614   : > { %v1866_v37 = vpop.f32.mrb[38].mxu0 }
 0x615   : > { %v2617_v3 = vpop.f32.mrb[39].mxu0 }
 0x61a   : > { %v1957_v39 = vpop.f32.mrb[40].mxu0 }
 0x61b   : > { %v1963_v0 = vadd.f32 %v1957_v39, %v1910_v60  ;;  %v2628_v43 = vpop.f32.mrb[41].mxu0 }
 0x61c   : > { %v1960_v45 = vpop.f32.mrb[42].mxu0 }
 0x61d   : > { %v2629_v47 = vpop.f32.mrb[43].mxu0 }
 0x61e   : > { %v2006_v9 = vpop.f32.mrb[40].mxu1 }
 0x61f   : > { %v2012_v46 = vadd.f32 %v2006_v9, %v1963_v0  ;;  %v2634_v49 = vpop.f32.mrb[41].mxu1 }
 0x620   : > { %v2009_v51 = vpop.f32.mrb[42].mxu1 }
 0x621   : > { %v2635_v44 = vpop.f32.mrb[43].mxu1 }
 0x622   : > { %v2055_v48 = vpop.f32.mrb[44].mxu0 }
 0x623   : > { %v2061_v50 = vadd.f32 %v2055_v48, %v2012_v46  ;;  %v2640_v54 = vpop.f32.mrb[45].mxu0 }
 0x624   : > { %v2058_v56 = vpop.f32.mrb[46].mxu0 }
 0x625   : > { %v2641_v53 = vpop.f32.mrb[47].mxu0 }
 0x626   : > { %v2104_v57 = vpop.f32.mrb[44].mxu1 }
 0x627   : > { %v2110_v38 = vadd.f32 %v2104_v57, %v2061_v50  ;;  %v2646_v40 = vpop.f32.mrb[45].mxu1 }
 0x628   : > { %v2107_v41 = vpop.f32.mrb[46].mxu1 }
 0x629   : > { %v2647_v62 = vpop.f32.mrb[47].mxu1 }
 0x62a   : > { %v2153_v4 = vpop.f32.mrb[48].mxu0 }
 0x62b   : > { %v2159_v8 = vadd.f32 %v2153_v4, %v2110_v38  ;;  %v2652_v12 = vpop.f32.mrb[49].mxu0 }
 0x62c   : > { %v2156_v13 = vpop.f32.mrb[50].mxu0 }
 0x62d   : > { %v2653_v21 = vpop.f32.mrb[51].mxu0 }
 0x62e   : > { %v2202_v27 = vpop.f32.mrb[48].mxu1 }
 0x62f   : > { %v2208_v15 = vadd.f32 %v2202_v27, %v2159_v8  ;;  %v2658_v63 = vpop.f32.mrb[49].mxu1 }
 0x630   : > { %v2205_v2 = vpop.f32.mrb[50].mxu1 }
 0x631   : > { %v2216_v14 = vadd.f32 %v2439_v59, %v2208_v15  ;;  %v2659_v16 = vpop.f32.mrb[51].mxu1 }
 0x633   : > { %2218 = vst.msk [vmem:[%s467_s23] sm:$0xff] %vm506_vm1, %v2216_v14 }
 0x634   : > { %2984 = shalt.err (!%p2981_p5)
}
 0x635   : > { %s2985_s20 = scalar_lea.hbm %s3807_s26, 128  ;;  %s2989_s9 = scalar_lea.hbm %s3901_s7, 256 }
 0x636   : > { %p2986_p6 = scmp.ne.s32.totalorder %s3807_s26, %s2985_s20  ;;  %p2990_p7 = scmp.lt.u32.totalorder %s3807_s26, %s3901_s7 }
 0x637   : > { %p2991_p11 = scmp.lt.u32.totalorder %s2989_s9, %s2985_s20  ;;  %p2993_p0 = scmp.lt.u32.totalorder %s2985_s20, %s3807_s26 }
 0x638   : > { %p2987_p12 = pnand %p2986_p6, %p3902_p1 }
 0x639   : > { %p2992_p9 = por %p2991_p11, %p2990_p7 }
 0x63a   : > { %p2988_p10 = pneg %p2987_p12 }
 0x63b   : > { %p2994_p4 = por %p2993_p0, %p2992_p9 }
 0x63d   : > { %p2995_p8 = pnand %p2994_p4, %p2988_p10 }
 0x63f   : > { %2998 = shalt.err (!%p2995_p8)
}
 0x640   : > { %2676 = dma.vmem_to_hbm [thread:$0]  (%p3902_p1), %s3809_s22, 128, %s3807_s26, %s2220_s25  }
 0x641 PF: > { %s3903_s17 = sld [smem:[#allocation22_spill]]  ;;  %s3904_s8 = sld [smem:[#allocation24_spill]] }
 0x642   : > { %p3906_p13 = scmp.ge.s32.totalorder %s3065_s14, 2 }
 0x647   : > { %s2246_s23 = sand.u32 1, %s3903_s17   ;;  %p3905_p2 = scmp.ne.s32.totalorder %s3904_s8, 0 }
 0x648   : > { %s2247_s3 = scalar_lea.sflag [#allocation9], %s2246_s23 }
 0x649   : > { %p2696_p3 = pnand %p3906_p13, %p3905_p2 }
 0x64b   : > { %3040 = dma.done.wait (!%p2696_p3), %s2247_s3, 128  }
 0x64c   : > { %3042 = vsyncadd (!%p2696_p3), %s2247_s3, 4294967168  ;;  %s29_s14 = sadd.s32 1, %s3065_s14   ;;  %s3907_s29 = smov %s3914_s30 }
 0x64d   : > { %p26_p5 = scmp.ge.s32.totalorder %s29_s14, 4   ;;  %s3908_s30 = smov %s3049_s10 }
 0x64e   : > { %s3909_s10 = smov %s3053_s11  ;;  %s3910_s11 = smov %s3300_s16 }
 0x64f   : > { %s3911_s12 = smov %s3061_s13  ;;  %s3912_s13 = smov %s3907_s29 }
 0x650   :  { %28 = sbr.rel (!%p26_p5) target bundleno = 15 (0xf), region = 162 }
 0x657   :  { %2252 = vsyncpa [#allocation8], 1 }
 0x658   :  { %2254 = vsyncpa [#allocation8 + $0x1], 1 }
 0x659   :  { %2255 = vsyncpa [#allocation11], 1 }
 0x65a   :  { %2257 = vsyncpa [#allocation11 + $0x1], 1 }
 0x65b   :  { %2258 = vsyncpa [#allocation14], 1 }
 0x65c   :  { %2259 = vsyncpa [#allocation9], 1 }
 0x65d   :  { %2261 = vsyncpa [#allocation9 + $0x1], 1 }

</bundles_post_ra>
